<compile_context>
chip_gen: v7x
topology: tpu7x:2x2x1
jax: 0.10.0
libtpu: 0.0.40
codegen_flags: <defaults>
</compile_context>

<pallas_src>
import jax
import jax.numpy as jnp
from jax import lax
from jax.experimental import pallas as pl
from jax.experimental.pallas import tpu as pltpu

LANE = 128


def _round_up(x, m):
    return ((x + m - 1) // m) * m


def _vmem_capacity_bytes():
    """Physical VMEM of the current TPU generation (fallback: v7x's 64 MiB)."""
    try:
        cap = getattr(pltpu.get_tpu_info(), "vmem_capacity_bytes", None)
        if cap:
            return int(cap)
    except Exception:
        pass
    return 64 * 1024 * 1024


# ---------------- masked epilogue helpers (channels zero-padded to c_pad) --------

def _channel_maskf(c_real, c_pad):
    return (lax.broadcasted_iota(jnp.int32, (1, c_pad), 1) < c_real).astype(jnp.float32)


def _masked_layernorm(h, gamma, beta, maskf, inv_c):
    """LayerNorm over the first c_real channels (padded channels of h are zero).

    gamma/beta are zero-padded so padded channels stay exactly zero. eps = 1e-5
    (torch default).
    """
    mean = jnp.sum(h * maskf, axis=-1, keepdims=True) * inv_c
    diff = (h - mean) * maskf
    var = jnp.sum(diff * diff, axis=-1, keepdims=True) * inv_c
    hn = (h - mean) * lax.rsqrt(var + 1e-5)
    return hn * gamma + beta


def _masked_log_softmax(h, maskf):
    hm = h * maskf + (maskf - 1.0) * 1e30        # -1e30 on padded channels
    m = jnp.max(hm, axis=-1, keepdims=True)
    e = h - m
    s = jnp.sum(jnp.exp(e) * maskf, axis=-1, keepdims=True)
    return e - jnp.log(s)


# ---------------- fast path kernel: A_hat fully VMEM-resident --------------------

def _make_resident_kernel(L, c_pad, dims, use_ln, layer_norm_first):
    def kernel(*refs):
        a_ref = refs[0]                      # (n_pad, n_pad) bf16  VMEM
        x_in = refs[1]                       # (n_pad, c_pad) bf16  VMEM
        ws = refs[2:2 + L]                   # (c_pad, c_pad) bf16
        bs = refs[2 + L:2 + 2 * L]           # (1, c_pad) f32
        gammas = refs[2 + 2 * L:2 + 3 * L]   # (1, c_pad) f32
        betas = refs[2 + 3 * L:2 + 4 * L]    # (1, c_pad) f32
        o_ref = refs[2 + 4 * L]              # (n_pad, c_pad) f32
        x_cur = refs[2 + 4 * L + 1]          # VMEM scratch (n_pad, c_pad) bf16

        if layer_norm_first:
            x0 = _masked_layernorm(x_in[...].astype(jnp.float32),
                                   gammas[0][...], betas[0][...],
                                   _channel_maskf(dims[0], c_pad),
                                   1.0 / float(dims[0]))
            x_cur[...] = x0.astype(jnp.bfloat16)
        else:
            x_cur[...] = x_in[...]

        for l in range(L):
            xw = jnp.dot(x_cur[...], ws[l][...],
                         preferred_element_type=jnp.float32).astype(jnp.bfloat16)
            h = jnp.dot(a_ref[...], xw,
                        preferred_element_type=jnp.float32) + bs[l][...]
            if l < L - 1:
                if use_ln:
                    h = _masked_layernorm(h, gammas[l + 1][...], betas[l + 1][...],
                                          _channel_maskf(dims[l + 1], c_pad),
                                          1.0 / float(dims[l + 1]))
                h = jnp.maximum(h, 0.0)       # ReLU; dropout == identity (eval)
                x_cur[...] = h.astype(jnp.bfloat16)
            else:
                o_ref[...] = _masked_log_softmax(h, _channel_maskf(dims[L], c_pad))

    return kernel


# ---------------- streaming path kernel: A_hat row-tiled from HBM ----------------

def _make_streaming_kernel(L, n_pad, c_pad, tm, dims, use_ln, layer_norm_first):
    R = n_pad // tm    # number of A_hat row tiles

    def kernel(*refs):
        a_hbm = refs[0]                      # (n_pad, n_pad) bf16, HBM (pl.ANY)
        x_hbm = refs[1]                      # (n_pad, c_pad) bf16, HBM (pl.ANY)
        ws = refs[2:2 + L]
        bs = refs[2 + L:2 + 2 * L]
        gammas = refs[2 + 2 * L:2 + 3 * L]
        betas = refs[2 + 3 * L:2 + 4 * L]
        o_ref = refs[2 + 4 * L]              # (n_pad, c_pad) f32
        x_cur = refs[2 + 4 * L + 1]          # VMEM (n_pad, c_pad) bf16: activation
        xw = refs[2 + 4 * L + 2]             # VMEM (n_pad, c_pad) bf16: X @ W staging
        a_buf = refs[2 + 4 * L + 3]          # VMEM (2, tm, n_pad) bf16: A row tiles
        sem = refs[2 + 4 * L + 4]            # DMA semaphores (2,)

        # Bring x into the activation scratch once (single DMA, bf16).
        cp = pltpu.make_async_copy(x_hbm, x_cur, sem.at[0])
        cp.start()
        cp.wait()
        if layer_norm_first:
            x0 = _masked_layernorm(x_cur[...].astype(jnp.float32),
                                   gammas[0][...], betas[0][...],
                                   _channel_maskf(dims[0], c_pad),
                                   1.0 / float(dims[0]))
            x_cur[...] = x0.astype(jnp.bfloat16)

        def start_fetch(row_start, slot):
            pltpu.make_async_copy(a_hbm.at[pl.ds(row_start, tm), :],
                                  a_buf.at[slot], sem.at[slot]).start()

        def wait_fetch(slot):
            pltpu.make_async_copy(a_hbm.at[pl.ds(0, tm), :],
                                  a_buf.at[slot], sem.at[slot]).wait()

        for l in range(L):
            # X @ W once per layer (full-array MXU sweep, f32 accumulation).
            xw[...] = jnp.dot(x_cur[...], ws[l][...],
                              preferred_element_type=jnp.float32
                              ).astype(jnp.bfloat16)

            # Hoist loop-invariant epilogue values out of the row-tile loop
            # (JAX does not CSE broadcast/iota inside the loop body).
            bias = bs[l][...]
            if l < L - 1 and use_ln:
                maskf = _channel_maskf(dims[l + 1], c_pad)
                inv_c = 1.0 / float(dims[l + 1])
                gamma = gammas[l + 1][...]
                beta = betas[l + 1][...]
            if l == L - 1:
                maskf_out = _channel_maskf(dims[L], c_pad)

            start_fetch(0, 0)

            @pl.loop(0, R)
            def _(rt):
                slot = rt & 1
                wait_fetch(slot)

                @pl.when(rt + 1 < R)
                def _():
                    start_fetch(pl.multiple_of((rt + 1) * tm, tm), 1 - slot)

                h = jnp.dot(a_buf[slot], xw[...],
                            preferred_element_type=jnp.float32) + bias
                rows = pl.ds(pl.multiple_of(rt * tm, tm), tm)
                if l < L - 1:
                    if use_ln:
                        h2 = _masked_layernorm(h, gamma, beta, maskf, inv_c)
                    else:
                        h2 = h
                    h2 = jnp.maximum(h2, 0.0)   # ReLU; dropout == identity (eval)
                    x_cur[rows, :] = h2.astype(jnp.bfloat16)
                else:
                    o_ref[rows, :] = _masked_log_softmax(h, maskf_out)

    return kernel


# ---------------- wrapper ---------------------------------------------------------

def gcn_forward(x, a_hat, params, layer_norm_first=False, use_ln=True,
                force_stream=False, tm=None):
    """Eval-mode forward matching GCN.forward (dropout == identity)."""
    # TODO(synk): training-mode dropout, the `layers=` early-exit, and
    # con_forward are not implemented (eval-mode full forward only).
    convs = params["convs"]
    lns = params["lns"]
    L = len(convs)
    N, c_in = x.shape
    dims = [c_in] + [w.shape[1] for (w, _) in convs]
    c_out = dims[-1]

    c_pad = _round_up(max(dims), LANE)          # lane-dense channel width

    # ---- generation-aware VMEM sizing (v5e/v6e: 128 MiB, v7x: 64 MiB) ------------
    vmem_cap = _vmem_capacity_bytes()
    budget = int(vmem_cap * 0.85)
    vmem_limit = min(max(32 * 1024 * 1024, budget), 112 * 1024 * 1024)

    param_bytes = 2 * L * (c_pad * c_pad * 2 + 3 * c_pad * 4)

    # Fast-path footprint (inputs/outputs counted x2 for pipeline buffers).
    n_fast = _round_up(N, LANE)
    fast_bytes = (2 * n_fast * n_fast * 2        # A_hat bf16
                  + 2 * n_fast * c_pad * 2       # x bf16
                  + 2 * n_fast * c_pad * 4       # out f32
                  + n_fast * c_pad * 2           # activation scratch
                  + param_bytes)
    use_fast = (not force_stream) and fast_bytes <= budget

    if use_fast:
        n_pad = n_fast
        tm_eff = None
    else:
        if tm is None:
            tm = 128
            for cand in (512, 256, 128):         # bigger tiles amortize DMA/epilogue
                n_cand = _round_up(N, cand)
                abuf = 4 * cand * n_cand         # (2, tm, n_pad) bf16 double buffer
                fp = (2 * n_cand * c_pad * 4     # out f32
                      + 2 * n_cand * c_pad * 2   # x_cur + xw scratch
                      + abuf + param_bytes)
                if fp <= budget and abuf <= budget // 3:
                    tm = cand
                    break
        tm_eff = tm
        n_pad = _round_up(N, tm_eff)

    def pad2(arr, r, c):
        arr = jnp.asarray(arr, jnp.float32)
        if arr.ndim == 1:
            arr = arr.reshape(1, -1)
        return jnp.pad(arr, ((0, r - arr.shape[0]), (0, c - arr.shape[1])))

    a_p = pad2(a_hat, n_pad, n_pad).astype(jnp.bfloat16)
    x_p = pad2(x, n_pad, c_pad).astype(jnp.bfloat16)    # bf16 in HBM: halves input DMA
    w_ps = [pad2(w, c_pad, c_pad).astype(jnp.bfloat16) for (w, _) in convs]
    b_ps = [pad2(b, 1, c_pad) for (_, b) in convs]
    g_ps = [pad2(g, 1, c_pad) for (g, _) in lns]
    beta_ps = [pad2(bt, 1, c_pad) for (_, bt) in lns]

    inputs = [a_p, x_p] + w_ps + b_ps + g_ps + beta_ps

    def full2d(shape):
        return pl.BlockSpec(shape, lambda i: (0, 0))

    if use_fast:
        kernel = _make_resident_kernel(L, c_pad, dims, use_ln, layer_norm_first)
        in_specs = [full2d(arr.shape) for arr in inputs]
        scratch = [pltpu.VMEM((n_pad, c_pad), jnp.bfloat16)]      # activation
    else:
        kernel = _make_streaming_kernel(L, n_pad, c_pad, tm_eff, dims,
                                        use_ln, layer_norm_first)
        in_specs = ([pl.BlockSpec(memory_space=pl.ANY),           # A_hat stays in HBM
                     pl.BlockSpec(memory_space=pl.ANY)]           # x DMA'd once
                    + [full2d(arr.shape) for arr in inputs[2:]])
        scratch = [pltpu.VMEM((n_pad, c_pad), jnp.bfloat16),      # activation
                   pltpu.VMEM((n_pad, c_pad), jnp.bfloat16),      # X @ W staging
                   pltpu.VMEM((2, tm_eff, n_pad), jnp.bfloat16),  # A row-tile dbl buf
                   pltpu.SemaphoreType.DMA((2,))]

    out_p = pl.pallas_call(
        kernel,
        out_shape=jax.ShapeDtypeStruct((n_pad, c_pad), jnp.float32),
        grid=(1,),
        in_specs=in_specs,
        out_specs=full2d((n_pad, c_pad)),
        scratch_shapes=scratch,
        compiler_params=pltpu.CompilerParams(
            dimension_semantics=("arbitrary",),
            vmem_limit_bytes=vmem_limit,
        ),
    )(*inputs)

    # TODO(synk): v7x dual-TensorCore row-tile parallelism (core_map +
    # VMEM_SHARED activation + core_barrier) is not implemented; single-TC kernel.
    return out_p[:N, :c_out]


# ---------------- pure-JAX f32 reference (for correctness check) -----------------

def gcn_forward_ref(x, a_hat, params, layer_norm_first=False, use_ln=True):
    def ln(v, g, b):
        mean = jnp.mean(v, axis=-1, keepdims=True)
        var = jnp.mean((v - mean) ** 2, axis=-1, keepdims=True)
        return (v - mean) * lax.rsqrt(var + 1e-5) * g + b

    convs = params["convs"]
    lns = params["lns"]
    if layer_norm_first:
        g0, b0 = lns[0]
        x = ln(x, g0, b0)
    for i in range(len(convs) - 1):
        w, b = convs[i]
        h = a_hat @ (x @ w) + b
        if use_ln:
            g, bt = lns[i + 1]
            h = ln(h, g, bt)
        x = jnp.maximum(h, 0.0)
    w, b = convs[-1]
    h = a_hat @ (x @ w) + b
    return jax.nn.log_softmax(h, axis=-1)


# ---------------- deterministic parameter / input construction -------------------

def glorot(key, fan_in, fan_out):
    limit = (6.0 / (fan_in + fan_out)) ** 0.5
    return jax.random.uniform(key, (fan_in, fan_out), jnp.float32, -limit, limit)


def make_params(key, in_channels, hidden_channels, out_channels, num_layers):
    dims = [in_channels] + [hidden_channels] * (num_layers - 1) + [out_channels]
    convs, lns = [], []
    ln_dims = [in_channels] + [hidden_channels] * (num_layers - 1)
    for d in ln_dims:
        lns.append((jnp.ones((1, d), jnp.float32), jnp.zeros((1, d), jnp.float32)))
    keys = jax.random.split(key, num_layers)
    for i in range(num_layers):
        w = glorot(keys[i], dims[i], dims[i + 1])
        b = jnp.zeros((1, dims[i + 1]), jnp.float32)
        convs.append((w, b))
    return {"convs": convs, "lns": lns}


def make_normalized_adj(key, n):
    a = (jax.random.uniform(key, (n, n)) < 0.1).astype(jnp.float32)
    a = jnp.maximum(a, a.T)                      # symmetrize
    a = a * (1.0 - jnp.eye(n)) + jnp.eye(n)      # add self-loops
    deg = jnp.sum(a, axis=-1)
    d_inv_sqrt = jax.lax.rsqrt(deg)
    return a * d_inv_sqrt[:, None] * d_inv_sqrt[None, :]


# ---------------- main ------------------------------------------------------------

if __name__ == "__main__":
    IN_C, HID_C, OUT_C, NUM_LAYERS = 16, 32, 8, 3
    key = jax.random.PRNGKey(0)
    k_x, k_a, k_p, k_x2, k_a2 = jax.random.split(key, 5)
    params = make_params(k_p, IN_C, HID_C, OUT_C, NUM_LAYERS)

    # --- test 1: small graph -> A_hat fully VMEM-resident fast path --------------
    N = 128
    x = jax.random.normal(k_x, (N, IN_C), jnp.float32)
    a_hat = make_normalized_adj(k_a, N)

    out = gcn_forward(x, a_hat, params, layer_norm_first=False, use_ln=True)
    out = jax.block_until_ready(out)
    assert out.shape == (N, OUT_C)
    assert bool(jnp.all(jnp.isfinite(out)))
    assert bool(jnp.allclose(jnp.sum(jnp.exp(out), axis=-1), 1.0, atol=1e-4))
    ref = gcn_forward_ref(x, a_hat, params, layer_norm_first=False, use_ln=True)
    err1 = float(jnp.max(jnp.abs(out - ref)))
    assert err1 < 0.15, f"fast path: max abs error vs f32 reference: {err1}"

    # --- test 2: forced HBM-streaming path (double-buffered row tiles, R=3) ------
    N2 = 384
    x2 = jax.random.normal(k_x2, (N2, IN_C), jnp.float32)
    a_hat2 = make_normalized_adj(k_a2, N2)
    out2 = gcn_forward(x2, a_hat2, params, layer_norm_first=False, use_ln=True,
                       force_stream=True, tm=128)
    out2 = jax.block_until_ready(out2)
    assert out2.shape == (N2, OUT_C)
    assert bool(jnp.all(jnp.isfinite(out2)))
    assert bool(jnp.allclose(jnp.sum(jnp.exp(out2), axis=-1), 1.0, atol=1e-4))
    ref2 = gcn_forward_ref(x2, a_hat2, params, layer_norm_first=False, use_ln=True)
    err2 = float(jnp.max(jnp.abs(out2 - ref2)))
    assert err2 < 0.2, f"streaming path: max abs error vs f32 reference: {err2}"

    print("KERNEL_OK")
</pallas_src>

<mosaic_0001>
module attributes {stable_mosaic.version = 11 : i64} {
  func.func @kernel(%arg0: i32, %arg1: memref<128x128xbf16, #tpu.memory_space<vmem>>, %arg2: memref<128x128xbf16, #tpu.memory_space<vmem>>, %arg3: memref<128x128xbf16, #tpu.memory_space<vmem>>, %arg4: memref<128x128xbf16, #tpu.memory_space<vmem>>, %arg5: memref<128x128xbf16, #tpu.memory_space<vmem>>, %arg6: memref<1x128xf32, #tpu.memory_space<vmem>>, %arg7: memref<1x128xf32, #tpu.memory_space<vmem>>, %arg8: memref<1x128xf32, #tpu.memory_space<vmem>>, %arg9: memref<1x128xf32, #tpu.memory_space<vmem>>, %arg10: memref<1x128xf32, #tpu.memory_space<vmem>>, %arg11: memref<1x128xf32, #tpu.memory_space<vmem>>, %arg12: memref<1x128xf32, #tpu.memory_space<vmem>>, %arg13: memref<1x128xf32, #tpu.memory_space<vmem>>, %arg14: memref<1x128xf32, #tpu.memory_space<vmem>>, %arg15: memref<128x128xf32, #tpu.memory_space<vmem>>, %arg16: memref<128x128xbf16, #tpu.memory_space<vmem>>) attributes {dimension_semantics = [#tpu.dimension_semantics<arbitrary>], iteration_bounds = array<i64: 1>, scalar_prefetch = 0 : i64, scratch_operands = 1 : i64, tpu.core_type = #tpu.core_type<tc>, window_params = [{pipeline_mode = #tpu.pipeline_mode<synchronous>, transform_indices = @transform_0, window_bounds = array<i64: 128, 128>}, {pipeline_mode = #tpu.pipeline_mode<synchronous>, transform_indices = @transform_1, window_bounds = array<i64: 128, 128>}, {pipeline_mode = #tpu.pipeline_mode<synchronous>, transform_indices = @transform_2, window_bounds = array<i64: 128, 128>}, {pipeline_mode = #tpu.pipeline_mode<synchronous>, transform_indices = @transform_3, window_bounds = array<i64: 128, 128>}, {pipeline_mode = #tpu.pipeline_mode<synchronous>, transform_indices = @transform_4, window_bounds = array<i64: 128, 128>}, {pipeline_mode = #tpu.pipeline_mode<synchronous>, transform_indices = @transform_5, window_bounds = array<i64: 1, 128>}, {pipeline_mode = #tpu.pipeline_mode<synchronous>, transform_indices = @transform_6, window_bounds = array<i64: 1, 128>}, {pipeline_mode = #tpu.pipeline_mode<synchronous>, transform_indices = @transform_7, window_bounds = array<i64: 1, 128>}, {pipeline_mode = #tpu.pipeline_mode<synchronous>, transform_indices = @transform_8, window_bounds = array<i64: 1, 128>}, {pipeline_mode = #tpu.pipeline_mode<synchronous>, transform_indices = @transform_9, window_bounds = array<i64: 1, 128>}, {pipeline_mode = #tpu.pipeline_mode<synchronous>, transform_indices = @transform_10, window_bounds = array<i64: 1, 128>}, {pipeline_mode = #tpu.pipeline_mode<synchronous>, transform_indices = @transform_11, window_bounds = array<i64: 1, 128>}, {pipeline_mode = #tpu.pipeline_mode<synchronous>, transform_indices = @transform_12, window_bounds = array<i64: 1, 128>}, {pipeline_mode = #tpu.pipeline_mode<synchronous>, transform_indices = @transform_13, window_bounds = array<i64: 1, 128>}, {pipeline_mode = #tpu.pipeline_mode<synchronous>, transform_indices = @transform_14, window_bounds = array<i64: 128, 128>}]} {
    %c0 = arith.constant 0 : index
    %c0_0 = arith.constant 0 : index
    %0 = vector.load %arg2[%c0, %c0_0] : memref<128x128xbf16, #tpu.memory_space<vmem>>, vector<128x128xbf16>
    %c0_1 = arith.constant 0 : index
    %c0_2 = arith.constant 0 : index
    %1 = vector.load %arg16[%c0_1, %c0_2] : memref<128x128xbf16, #tpu.memory_space<vmem>>, vector<128x128xbf16>
    tpu.vector_store %arg16[%c0_1, %c0_2], %0 {strides = array<i32>} : memref<128x128xbf16, #tpu.memory_space<vmem>>, vector<128x128xbf16>,
    %c0_3 = arith.constant 0 : index
    %c0_4 = arith.constant 0 : index
    %2 = vector.load %arg16[%c0_3, %c0_4] : memref<128x128xbf16, #tpu.memory_space<vmem>>, vector<128x128xbf16>
    %c0_5 = arith.constant 0 : index
    %c0_6 = arith.constant 0 : index
    %3 = vector.load %arg3[%c0_5, %c0_6] : memref<128x128xbf16, #tpu.memory_space<vmem>>, vector<128x128xbf16>
    %cst = arith.constant dense<0.000000e+00> : vector<128x128xf32>
    %4 = tpu.matmul %2, %3, %cst {dimension_numbers = #tpu.dot_dimension_numbers<[1], [0], [0], [1], [0, 0, 1, 1], [], []>} : vector<128x128xbf16>, vector<128x128xbf16>, vector<128x128xf32> -> vector<128x128xf32>
    %5 = arith.truncf %4 : vector<128x128xf32> to vector<128x128xbf16>
    %c0_7 = arith.constant 0 : index
    %c0_8 = arith.constant 0 : index
    %6 = vector.load %arg1[%c0_7, %c0_8] : memref<128x128xbf16, #tpu.memory_space<vmem>>, vector<128x128xbf16>
    %cst_9 = arith.constant dense<0.000000e+00> : vector<128x128xf32>
    %7 = tpu.matmul %6, %5, %cst_9 {dimension_numbers = #tpu.dot_dimension_numbers<[1], [0], [0], [1], [0, 0, 1, 1], [], []>} : vector<128x128xbf16>, vector<128x128xbf16>, vector<128x128xf32> -> vector<128x128xf32>
    %c0_10 = arith.constant 0 : index
    %c0_11 = arith.constant 0 : index
    %8 = vector.load %arg6[%c0_10, %c0_11] : memref<1x128xf32, #tpu.memory_space<vmem>>, vector<1x128xf32>
    %9 = vector.broadcast %8 : vector<1x128xf32> to vector<128x128xf32>
    %10 = arith.addf %7, %9 : vector<128x128xf32>
    %c0_12 = arith.constant 0 : index
    %c0_13 = arith.constant 0 : index
    %11 = vector.load %arg10[%c0_12, %c0_13] : memref<1x128xf32, #tpu.memory_space<vmem>>, vector<1x128xf32>
    %c0_14 = arith.constant 0 : index
    %c0_15 = arith.constant 0 : index
    %12 = vector.load %arg13[%c0_14, %c0_15] : memref<1x128xf32, #tpu.memory_space<vmem>>, vector<1x128xf32>
    %13 = tpu.iota {dimensions = array<i32: 1>} : vector<1x128xi32>
    %c32_i32 = arith.constant 32 : i32
    %14 = vector.broadcast %c32_i32 : i32 to vector<1x128xi32>
    %15 = arith.cmpi slt, %13, %14 : vector<1x128xi32>
    %16 = arith.extui %15 : vector<1x128xi1> to vector<1x128xi32>
    %17 = arith.sitofp %16 : vector<1x128xi32> to vector<1x128xf32>
    %18 = vector.broadcast %17 : vector<1x128xf32> to vector<128x128xf32>
    %19 = arith.mulf %10, %18 : vector<128x128xf32>
    %cst_16 = arith.constant dense<0.000000e+00> : vector<128xf32>
    %20 = vector.multi_reduction <add>, %19, %cst_16 [1] : vector<128x128xf32> to vector<128xf32>
    %21 = vector.shape_cast %20 : vector<128xf32> to vector<128x1xf32>
    %cst_17 = arith.constant 3.125000e-02 : f32
    %22 = vector.broadcast %cst_17 : f32 to vector<128x1xf32>
    %23 = arith.mulf %21, %22 : vector<128x1xf32>
    %24 = vector.broadcast %23 : vector<128x1xf32> to vector<128x128xf32>
    %25 = arith.subf %10, %24 : vector<128x128xf32>
    %26 = vector.broadcast %17 : vector<1x128xf32> to vector<128x128xf32>
    %27 = arith.mulf %25, %26 : vector<128x128xf32>
    %28 = arith.mulf %27, %27 : vector<128x128xf32>
    %cst_18 = arith.constant dense<0.000000e+00> : vector<128xf32>
    %29 = vector.multi_reduction <add>, %28, %cst_18 [1] : vector<128x128xf32> to vector<128xf32>
    %30 = vector.shape_cast %29 : vector<128xf32> to vector<128x1xf32>
    %cst_19 = arith.constant 3.125000e-02 : f32
    %31 = vector.broadcast %cst_19 : f32 to vector<128x1xf32>
    %32 = arith.mulf %30, %31 : vector<128x1xf32>
    %33 = vector.broadcast %23 : vector<128x1xf32> to vector<128x128xf32>
    %34 = arith.subf %10, %33 : vector<128x128xf32>
    %cst_20 = arith.constant 9.99999974E-6 : f32
    %35 = vector.broadcast %cst_20 : f32 to vector<128x1xf32>
    %36 = arith.addf %32, %35 : vector<128x1xf32>
    %37 = math.rsqrt %36 : vector<128x1xf32>
    %38 = vector.broadcast %37 : vector<128x1xf32> to vector<128x128xf32>
    %39 = arith.mulf %34, %38 : vector<128x128xf32>
    %40 = vector.broadcast %11 : vector<1x128xf32> to vector<128x128xf32>
    %41 = arith.mulf %39, %40 : vector<128x128xf32>
    %42 = vector.broadcast %12 : vector<1x128xf32> to vector<128x128xf32>
    %43 = arith.addf %41, %42 : vector<128x128xf32>
    %cst_21 = arith.constant 0.000000e+00 : f32
    %44 = vector.broadcast %cst_21 : f32 to vector<128x128xf32>
    %45 = arith.maximumf %43, %44 : vector<128x128xf32>
    %46 = arith.truncf %45 : vector<128x128xf32> to vector<128x128xbf16>
    %c0_22 = arith.constant 0 : index
    %c0_23 = arith.constant 0 : index
    %47 = vector.load %arg16[%c0_22, %c0_23] : memref<128x128xbf16, #tpu.memory_space<vmem>>, vector<128x128xbf16>
    tpu.vector_store %arg16[%c0_22, %c0_23], %46 {strides = array<i32>} : memref<128x128xbf16, #tpu.memory_space<vmem>>, vector<128x128xbf16>,
    %c0_24 = arith.constant 0 : index
    %c0_25 = arith.constant 0 : index
    %48 = vector.load %arg16[%c0_24, %c0_25] : memref<128x128xbf16, #tpu.memory_space<vmem>>, vector<128x128xbf16>
    %c0_26 = arith.constant 0 : index
    %c0_27 = arith.constant 0 : index
    %49 = vector.load %arg4[%c0_26, %c0_27] : memref<128x128xbf16, #tpu.memory_space<vmem>>, vector<128x128xbf16>
    %cst_28 = arith.constant dense<0.000000e+00> : vector<128x128xf32>
    %50 = tpu.matmul %48, %49, %cst_28 {dimension_numbers = #tpu.dot_dimension_numbers<[1], [0], [0], [1], [0, 0, 1, 1], [], []>} : vector<128x128xbf16>, vector<128x128xbf16>, vector<128x128xf32> -> vector<128x128xf32>
    %51 = arith.truncf %50 : vector<128x128xf32> to vector<128x128xbf16>
    %c0_29 = arith.constant 0 : index
    %c0_30 = arith.constant 0 : index
    %52 = vector.load %arg1[%c0_29, %c0_30] : memref<128x128xbf16, #tpu.memory_space<vmem>>, vector<128x128xbf16>
    %cst_31 = arith.constant dense<0.000000e+00> : vector<128x128xf32>
    %53 = tpu.matmul %52, %51, %cst_31 {dimension_numbers = #tpu.dot_dimension_numbers<[1], [0], [0], [1], [0, 0, 1, 1], [], []>} : vector<128x128xbf16>, vector<128x128xbf16>, vector<128x128xf32> -> vector<128x128xf32>
    %c0_32 = arith.constant 0 : index
    %c0_33 = arith.constant 0 : index
    %54 = vector.load %arg7[%c0_32, %c0_33] : memref<1x128xf32, #tpu.memory_space<vmem>>, vector<1x128xf32>
    %55 = vector.broadcast %54 : vector<1x128xf32> to vector<128x128xf32>
    %56 = arith.addf %53, %55 : vector<128x128xf32>
    %c0_34 = arith.constant 0 : index
    %c0_35 = arith.constant 0 : index
    %57 = vector.load %arg11[%c0_34, %c0_35] : memref<1x128xf32, #tpu.memory_space<vmem>>, vector<1x128xf32>
    %c0_36 = arith.constant 0 : index
    %c0_37 = arith.constant 0 : index
    %58 = vector.load %arg14[%c0_36, %c0_37] : memref<1x128xf32, #tpu.memory_space<vmem>>, vector<1x128xf32>
    %59 = tpu.iota {dimensions = array<i32: 1>} : vector<1x128xi32>
    %c32_i32_38 = arith.constant 32 : i32
    %60 = vector.broadcast %c32_i32_38 : i32 to vector<1x128xi32>
    %61 = arith.cmpi slt, %59, %60 : vector<1x128xi32>
    %62 = arith.extui %61 : vector<1x128xi1> to vector<1x128xi32>
    %63 = arith.sitofp %62 : vector<1x128xi32> to vector<1x128xf32>
    %64 = vector.broadcast %63 : vector<1x128xf32> to vector<128x128xf32>
    %65 = arith.mulf %56, %64 : vector<128x128xf32>
    %cst_39 = arith.constant dense<0.000000e+00> : vector<128xf32>
    %66 = vector.multi_reduction <add>, %65, %cst_39 [1] : vector<128x128xf32> to vector<128xf32>
    %67 = vector.shape_cast %66 : vector<128xf32> to vector<128x1xf32>
    %cst_40 = arith.constant 3.125000e-02 : f32
    %68 = vector.broadcast %cst_40 : f32 to vector<128x1xf32>
    %69 = arith.mulf %67, %68 : vector<128x1xf32>
    %70 = vector.broadcast %69 : vector<128x1xf32> to vector<128x128xf32>
    %71 = arith.subf %56, %70 : vector<128x128xf32>
    %72 = vector.broadcast %63 : vector<1x128xf32> to vector<128x128xf32>
    %73 = arith.mulf %71, %72 : vector<128x128xf32>
    %74 = arith.mulf %73, %73 : vector<128x128xf32>
    %cst_41 = arith.constant dense<0.000000e+00> : vector<128xf32>
    %75 = vector.multi_reduction <add>, %74, %cst_41 [1] : vector<128x128xf32> to vector<128xf32>
    %76 = vector.shape_cast %75 : vector<128xf32> to vector<128x1xf32>
    %cst_42 = arith.constant 3.125000e-02 : f32
    %77 = vector.broadcast %cst_42 : f32 to vector<128x1xf32>
    %78 = arith.mulf %76, %77 : vector<128x1xf32>
    %79 = vector.broadcast %69 : vector<128x1xf32> to vector<128x128xf32>
    %80 = arith.subf %56, %79 : vector<128x128xf32>
    %cst_43 = arith.constant 9.99999974E-6 : f32
    %81 = vector.broadcast %cst_43 : f32 to vector<128x1xf32>
    %82 = arith.addf %78, %81 : vector<128x1xf32>
    %83 = math.rsqrt %82 : vector<128x1xf32>
    %84 = vector.broadcast %83 : vector<128x1xf32> to vector<128x128xf32>
    %85 = arith.mulf %80, %84 : vector<128x128xf32>
    %86 = vector.broadcast %57 : vector<1x128xf32> to vector<128x128xf32>
    %87 = arith.mulf %85, %86 : vector<128x128xf32>
    %88 = vector.broadcast %58 : vector<1x128xf32> to vector<128x128xf32>
    %89 = arith.addf %87, %88 : vector<128x128xf32>
    %cst_44 = arith.constant 0.000000e+00 : f32
    %90 = vector.broadcast %cst_44 : f32 to vector<128x128xf32>
    %91 = arith.maximumf %89, %90 : vector<128x128xf32>
    %92 = arith.truncf %91 : vector<128x128xf32> to vector<128x128xbf16>
    %c0_45 = arith.constant 0 : index
    %c0_46 = arith.constant 0 : index
    %93 = vector.load %arg16[%c0_45, %c0_46] : memref<128x128xbf16, #tpu.memory_space<vmem>>, vector<128x128xbf16>
    tpu.vector_store %arg16[%c0_45, %c0_46], %92 {strides = array<i32>} : memref<128x128xbf16, #tpu.memory_space<vmem>>, vector<128x128xbf16>,
    %c0_47 = arith.constant 0 : index
    %c0_48 = arith.constant 0 : index
    %94 = vector.load %arg16[%c0_47, %c0_48] : memref<128x128xbf16, #tpu.memory_space<vmem>>, vector<128x128xbf16>
    %c0_49 = arith.constant 0 : index
    %c0_50 = arith.constant 0 : index
    %95 = vector.load %arg5[%c0_49, %c0_50] : memref<128x128xbf16, #tpu.memory_space<vmem>>, vector<128x128xbf16>
    %cst_51 = arith.constant dense<0.000000e+00> : vector<128x128xf32>
    %96 = tpu.matmul %94, %95, %cst_51 {dimension_numbers = #tpu.dot_dimension_numbers<[1], [0], [0], [1], [0, 0, 1, 1], [], []>} : vector<128x128xbf16>, vector<128x128xbf16>, vector<128x128xf32> -> vector<128x128xf32>
    %97 = arith.truncf %96 : vector<128x128xf32> to vector<128x128xbf16>
    %c0_52 = arith.constant 0 : index
    %c0_53 = arith.constant 0 : index
    %98 = vector.load %arg1[%c0_52, %c0_53] : memref<128x128xbf16, #tpu.memory_space<vmem>>, vector<128x128xbf16>
    %cst_54 = arith.constant dense<0.000000e+00> : vector<128x128xf32>
    %99 = tpu.matmul %98, %97, %cst_54 {dimension_numbers = #tpu.dot_dimension_numbers<[1], [0], [0], [1], [0, 0, 1, 1], [], []>} : vector<128x128xbf16>, vector<128x128xbf16>, vector<128x128xf32> -> vector<128x128xf32>
    %c0_55 = arith.constant 0 : index
    %c0_56 = arith.constant 0 : index
    %100 = vector.load %arg8[%c0_55, %c0_56] : memref<1x128xf32, #tpu.memory_space<vmem>>, vector<1x128xf32>
    %101 = vector.broadcast %100 : vector<1x128xf32> to vector<128x128xf32>
    %102 = arith.addf %99, %101 : vector<128x128xf32>
    %103 = tpu.iota {dimensions = array<i32: 1>} : vector<1x128xi32>
    %c8_i32 = arith.constant 8 : i32
    %104 = vector.broadcast %c8_i32 : i32 to vector<1x128xi32>
    %105 = arith.cmpi slt, %103, %104 : vector<1x128xi32>
    %106 = arith.extui %105 : vector<1x128xi1> to vector<1x128xi32>
    %107 = arith.sitofp %106 : vector<1x128xi32> to vector<1x128xf32>
    %108 = vector.broadcast %107 : vector<1x128xf32> to vector<128x128xf32>
    %109 = arith.mulf %102, %108 : vector<128x128xf32>
    %cst_57 = arith.constant 1.000000e+00 : f32
    %110 = vector.broadcast %cst_57 : f32 to vector<1x128xf32>
    %111 = arith.subf %107, %110 : vector<1x128xf32>
    %cst_58 = arith.constant 1.000000e+30 : f32
    %112 = vector.broadcast %cst_58 : f32 to vector<1x128xf32>
    %113 = arith.mulf %111, %112 : vector<1x128xf32>
    %114 = vector.broadcast %113 : vector<1x128xf32> to vector<128x128xf32>
    %115 = arith.addf %109, %114 : vector<128x128xf32>
    %cst_59 = arith.constant dense<0xFF800000> : vector<128xf32>
    %116 = vector.multi_reduction <maximumf>, %115, %cst_59 [1] : vector<128x128xf32> to vector<128xf32>
    %117 = vector.shape_cast %116 : vector<128xf32> to vector<128x1xf32>
    %118 = vector.broadcast %117 : vector<128x1xf32> to vector<128x128xf32>
    %119 = arith.subf %102, %118 : vector<128x128xf32>
    %120 = math.exp %119 : vector<128x128xf32>
    %121 = vector.broadcast %107 : vector<1x128xf32> to vector<128x128xf32>
    %122 = arith.mulf %120, %121 : vector<128x128xf32>
    %cst_60 = arith.constant dense<0.000000e+00> : vector<128xf32>
    %123 = vector.multi_reduction <add>, %122, %cst_60 [1] : vector<128x128xf32> to vector<128xf32>
    %124 = vector.shape_cast %123 : vector<128xf32> to vector<128x1xf32>
    %125 = math.log %124 : vector<128x1xf32>
    %126 = vector.broadcast %125 : vector<128x1xf32> to vector<128x128xf32>
    %127 = arith.subf %119, %126 : vector<128x128xf32>
    %c0_61 = arith.constant 0 : index
    %c0_62 = arith.constant 0 : index
    %128 = vector.load %arg15[%c0_61, %c0_62] : memref<128x128xf32, #tpu.memory_space<vmem>>, vector<128x128xf32>
    tpu.vector_store %arg15[%c0_61, %c0_62], %127 {strides = array<i32>} : memref<128x128xf32, #tpu.memory_space<vmem>>, vector<128x128xf32>,
    return
  }
  func.func @transform_0(%arg0: i32) -> (i32, i32) {
    %c0_i32 = arith.constant 0 : i32
    %c0_i32_0 = arith.constant 0 : i32
    %c0_i32_1 = arith.constant 0 : i32
    return %c0_i32, %c0_i32_0 : i32, i32
  }
  func.func @transform_1(%arg0: i32) -> (i32, i32) {
    %c0_i32 = arith.constant 0 : i32
    %c0_i32_0 = arith.constant 0 : i32
    %c0_i32_1 = arith.constant 0 : i32
    return %c0_i32, %c0_i32_0 : i32, i32
  }
  func.func @transform_2(%arg0: i32) -> (i32, i32) {
    %c0_i32 = arith.constant 0 : i32
    %c0_i32_0 = arith.constant 0 : i32
    %c0_i32_1 = arith.constant 0 : i32
    return %c0_i32, %c0_i32_0 : i32, i32
  }
  func.func @transform_3(%arg0: i32) -> (i32, i32) {
    %c0_i32 = arith.constant 0 : i32
    %c0_i32_0 = arith.constant 0 : i32
    %c0_i32_1 = arith.constant 0 : i32
    return %c0_i32, %c0_i32_0 : i32, i32
  }
  func.func @transform_4(%arg0: i32) -> (i32, i32) {
    %c0_i32 = arith.constant 0 : i32
    %c0_i32_0 = arith.constant 0 : i32
    %c0_i32_1 = arith.constant 0 : i32
    return %c0_i32, %c0_i32_0 : i32, i32
  }
  func.func @transform_5(%arg0: i32) -> (i32, i32) {
    %c0_i32 = arith.constant 0 : i32
    %c0_i32_0 = arith.constant 0 : i32
    %c0_i32_1 = arith.constant 0 : i32
    return %c0_i32, %c0_i32_0 : i32, i32
  }
  func.func @transform_6(%arg0: i32) -> (i32, i32) {
    %c0_i32 = arith.constant 0 : i32
    %c0_i32_0 = arith.constant 0 : i32
    %c0_i32_1 = arith.constant 0 : i32
    return %c0_i32, %c0_i32_0 : i32, i32
  }
  func.func @transform_7(%arg0: i32) -> (i32, i32) {
    %c0_i32 = arith.constant 0 : i32
    %c0_i32_0 = arith.constant 0 : i32
    %c0_i32_1 = arith.constant 0 : i32
    return %c0_i32, %c0_i32_0 : i32, i32
  }
  func.func @transform_8(%arg0: i32) -> (i32, i32) {
    %c0_i32 = arith.constant 0 : i32
    %c0_i32_0 = arith.constant 0 : i32
    %c0_i32_1 = arith.constant 0 : i32
    return %c0_i32, %c0_i32_0 : i32, i32
  }
  func.func @transform_9(%arg0: i32) -> (i32, i32) {
    %c0_i32 = arith.constant 0 : i32
    %c0_i32_0 = arith.constant 0 : i32
    %c0_i32_1 = arith.constant 0 : i32
    return %c0_i32, %c0_i32_0 : i32, i32
  }
  func.func @transform_10(%arg0: i32) -> (i32, i32) {
    %c0_i32 = arith.constant 0 : i32
    %c0_i32_0 = arith.constant 0 : i32
    %c0_i32_1 = arith.constant 0 : i32
    return %c0_i32, %c0_i32_0 : i32, i32
  }
  func.func @transform_11(%arg0: i32) -> (i32, i32) {
    %c0_i32 = arith.constant 0 : i32
    %c0_i32_0 = arith.constant 0 : i32
    %c0_i32_1 = arith.constant 0 : i32
    return %c0_i32, %c0_i32_0 : i32, i32
  }
  func.func @transform_12(%arg0: i32) -> (i32, i32) {
    %c0_i32 = arith.constant 0 : i32
    %c0_i32_0 = arith.constant 0 : i32
    %c0_i32_1 = arith.constant 0 : i32
    return %c0_i32, %c0_i32_0 : i32, i32
  }
  func.func @transform_13(%arg0: i32) -> (i32, i32) {
    %c0_i32 = arith.constant 0 : i32
    %c0_i32_0 = arith.constant 0 : i32
    %c0_i32_1 = arith.constant 0 : i32
    return %c0_i32, %c0_i32_0 : i32, i32
  }
  func.func @transform_14(%arg0: i32) -> (i32, i32) {
    %c0_i32 = arith.constant 0 : i32
    %c0_i32_0 = arith.constant 0 : i32
    %c0_i32_1 = arith.constant 0 : i32
    return %c0_i32, %c0_i32_0 : i32, i32
  }
}

</mosaic_0001>

<bundles_post_ra>
// kernel: tpu_custom_call.1
= control target key start
LH: loop header
LB: loop body
LE: loop exit
PB: predicated region body
PF: predicated region fallthrough
CT: control target
= control target key end

     0   :  { %19 = vsyncpa [#allocation4], 0  ;;  %s3545_s0 = inlined_call_operand.hbm [shape: bf16[128,128], index: 0, kind: input, shape index: {}]   ;;  %s3546_s1 = inlined_call_operand.hbm [shape: bf16[128,128], index: 1, kind: input, shape index: {}]   ;;  %s3547_s2 = inlined_call_operand.hbm [shape: bf16[128,128], index: 2, kind: input, shape index: {}]   ;;  %s3548_s3 = inlined_call_operand.hbm [shape: bf16[128,128], index: 3, kind: input, shape index: {}]   ;;  %s3549_s4 = inlined_call_operand.hbm [shape: bf16[128,128], index: 4, kind: input, shape index: {}]   ;;  %s3550_s5 = inlined_call_operand.vmem [shape: f32[1,128], index: 5, kind: input, shape index: {}]   ;;  %s3551_s6 = inlined_call_operand.vmem [shape: f32[1,128], index: 6, kind: input, shape index: {}]   ;;  %s3552_s7 = inlined_call_operand.vmem [shape: f32[1,128], index: 7, kind: input, shape index: {}]   ;;  %s3553_s8 = inlined_call_operand.vmem [shape: f32[1,128], index: 8, kind: input, shape index: {}]   ;;  %s3554_s9 = inlined_call_operand.vmem [shape: f32[1,128], index: 9, kind: input, shape index: {}]   ;;  %s3555_s10 = inlined_call_operand.vmem [shape: f32[1,128], index: 10, kind: input, shape index: {}]   ;;  %s3556_s11 = inlined_call_operand.vmem [shape: f32[1,128], index: 11, kind: input, shape index: {}]   ;;  %s3557_s12 = inlined_call_operand.vmem [shape: f32[1,128], index: 12, kind: input, shape index: {}]   ;;  %s3558_s13 = inlined_call_operand.vmem [shape: f32[1,128], index: 13, kind: input, shape index: {}]   ;;  %s3559_s14 = inlined_call_operand.hbm [shape: f32[128,128], index: 14, kind: output, shape index: {}]  }
   0x1   :  { %20 = vsyncpa [#allocation7], 0 }
   0x2   :  { %21 = vsyncpa [#allocation10], 0 }
   0x3   :  { %22 = vsyncpa [#allocation5], 0  ;;  %s2738_s8 = smov [#allocation6]   ;;  %s2739_s30 = smov [#allocation9]  }
   0x4   :  { %s40_s29 = sshll.u32 %s2738_s8, 4  ;;  %s64_s15 = sshll.u32 %s2739_s30, 4  ;;  %s41_s29 = int_to_ptr.vmem [resolvable:$true] %s40_s29  ;;  %s2824_s15 = int_to_ptr.vmem [resolvable:$true] %s64_s15 }
   0x5   :  { %s2598_s17 = scalar_lea.hbm %s3546_s1, 1024 }
   0x6   :  { %p2599_p0 = scmp.ne.s32.totalorder %s3546_s1, %s2598_s17  ;;  %p2602_p1 = scmp.lt.u32.totalorder %s2598_s17, %s3546_s1 }
   0x8   :  { %p2604_p2 = pnand %p2602_p1, %p2599_p0 }
   0xa   :  { %2607 = shalt.err (!%p2604_p2)
}
   0xb   :  { %s2608_s22 = scalar_lea.vmem %s41_s29, 1024  ;;  %p2613_p4 = scmp.lt.s32.totalorder %s41_s29, %s41_s29 }
   0xc   :  { %p2609_p3 = scmp.ne.s32.totalorder %s41_s29, %s2608_s22  ;;  %p2614_p5 = scmp.lt.s32.totalorder %s2608_s22, %s2608_s22 }
   0xe   :  { %p2615_p6 = por %p2614_p5, %p2613_p4 }
  0x10   :  { %p2616_p7 = pnand %p2615_p6, %p2609_p3 }
  0x12   :  { %2619 = shalt.err (!%p2616_p7)
}
  0x13   :  { %s2740_s23 = smov 64   ;;  %s2741_s24 = smov 4  }
  0x14   :  { %46 = dma.hbm_to_vmem [thread:$0]  %s3546_s1, 1024, %s41_s29, [#allocation7], %s2740_s23, %s2740_s23, %s2741_s24  }
  0x15   :  { %s2620_s8 = scalar_lea.hbm %s3548_s3, 1024 }
  0x16   :  { %p2621_p8 = scmp.ne.s32.totalorder %s3548_s3, %s2620_s8  ;;  %p2624_p9 = scmp.lt.u32.totalorder %s2620_s8, %s3548_s3 }
  0x18   :  { %p2626_p10 = pnand %p2624_p9, %p2621_p8 }
  0x1a   :  { %2629 = shalt.err (!%p2626_p10)
}
  0x1b   :  { %s2630_s18 = scalar_lea.vmem %s2824_s15, 1024  ;;  %p2635_p12 = scmp.lt.s32.totalorder %s2824_s15, %s2824_s15 }
  0x1c   :  { %p2631_p11 = scmp.ne.s32.totalorder %s2824_s15, %s2630_s18  ;;  %p2636_p13 = scmp.lt.s32.totalorder %s2630_s18, %s2630_s18 }
  0x1e   :  { %p2637_p0 = por %p2636_p13, %p2635_p12 }
  0x20   :  { %p2638_p1 = pnand %p2637_p0, %p2631_p11 }
  0x22   :  { %2641 = shalt.err (!%p2638_p1)
}
  0x23   :  { %70 = dma.hbm_to_vmem [thread:$0]  %s3548_s3, 1024, %s2824_s15, [#allocation10], %s2740_s23, %s2740_s23, %s2741_s24  }
  0x24   :  { %s2742_s19 = smov [#allocation3]   ;;  %s2743_s21 = smov [#allocation8]  }
  0x25   :  { %s28_s20 = sshll.u32 %s2742_s19, 4  ;;  %s52_s22 = sshll.u32 %s2743_s21, 4  ;;  %s29_s20 = int_to_ptr.vmem [resolvable:$true] %s28_s20  ;;  %s2861_s22 = int_to_ptr.vmem [resolvable:$true] %s52_s22 }
  0x26   :  { %s2642_s27 = scalar_lea.hbm %s3545_s0, 1024 }
  0x27   :  { %p2643_p2 = scmp.ne.s32.totalorder %s3545_s0, %s2642_s27  ;;  %p2646_p3 = scmp.lt.u32.totalorder %s2642_s27, %s3545_s0 }
  0x29   :  { %p2648_p4 = pnand %p2646_p3, %p2643_p2 }
  0x2b   :  { %2651 = shalt.err (!%p2648_p4)
}
  0x2c   :  { %s2652_s3 = scalar_lea.vmem %s29_s20, 1024  ;;  %p2657_p6 = scmp.lt.s32.totalorder %s29_s20, %s29_s20 }
  0x2d   :  { %p2653_p5 = scmp.ne.s32.totalorder %s29_s20, %s2652_s3  ;;  %p2658_p7 = scmp.lt.s32.totalorder %s2652_s3, %s2652_s3 }
  0x2f   :  { %p2659_p8 = por %p2658_p7, %p2657_p6 }
  0x31   :  { %p2660_p9 = pnand %p2659_p8, %p2653_p5 }
  0x33   :  { %2663 = shalt.err (!%p2660_p9)
}
  0x34   :  { %34 = dma.hbm_to_vmem [thread:$0]  %s3545_s0, 1024, %s29_s20, [#allocation4], %s2740_s23, %s2740_s23, %s2741_s24  }
  0x35   :  { %s2664_s1 = scalar_lea.hbm %s3547_s2, 1024 }
  0x36   :  { %p2665_p10 = scmp.ne.s32.totalorder %s3547_s2, %s2664_s1  ;;  %p2668_p11 = scmp.lt.u32.totalorder %s2664_s1, %s3547_s2 }
  0x38   :  { %p2670_p12 = pnand %p2668_p11, %p2665_p10 }
  0x3a   :  { %2673 = shalt.err (!%p2670_p12)
}
  0x3b   :  { %s2674_s26 = scalar_lea.vmem %s2861_s22, 1024  ;;  %p2679_p0 = scmp.lt.s32.totalorder %s2861_s22, %s2861_s22 }
  0x3c   :  { %p2675_p13 = scmp.ne.s32.totalorder %s2861_s22, %s2674_s26  ;;  %p2680_p1 = scmp.lt.s32.totalorder %s2674_s26, %s2674_s26 }
  0x3e   :  { %p2681_p2 = por %p2680_p1, %p2679_p0 }
  0x40   :  { %p2682_p3 = pnand %p2681_p2, %p2675_p13 }
  0x42   :  { %2685 = shalt.err (!%p2682_p3)
}
  0x43   :  { %58 = dma.hbm_to_vmem [thread:$0]  %s3547_s2, 1024, %s2861_s22, [#allocation7], %s2740_s23, %s2740_s23, %s2741_s24  }
  0x44   :  { %s2744_s27 = smov [#allocation11]   ;;  %s2686_s11 = scalar_lea.hbm %s3549_s4, 1024 }
  0x45   :  { %s76_s28 = sshll.u32 %s2744_s27, 4  ;;  %p2687_p4 = scmp.ne.s32.totalorder %s3549_s4, %s2686_s11  ;;  %s77_s28 = int_to_ptr.vmem [resolvable:$true] %s76_s28 }
  0x46   :  { %p2690_p5 = scmp.lt.u32.totalorder %s2686_s11, %s3549_s4 }
  0x48   :  { %p2692_p6 = pnand %p2690_p5, %p2687_p4 }
  0x4a   :  { %2695 = shalt.err (!%p2692_p6)
}
  0x4b   :  { %s2696_s18 = scalar_lea.vmem %s77_s28, 1024  ;;  %p2701_p8 = scmp.lt.s32.totalorder %s77_s28, %s77_s28 }
  0x4c   :  { %p2697_p7 = scmp.ne.s32.totalorder %s77_s28, %s2696_s18  ;;  %p2702_p9 = scmp.lt.s32.totalorder %s2696_s18, %s2696_s18 }
  0x4e   :  { %p2703_p10 = por %p2702_p9, %p2701_p8 }
  0x50   :  { %p2704_p11 = pnand %p2703_p10, %p2697_p7 }
  0x52   :  { %2707 = shalt.err (!%p2704_p11)
}
  0x53   :  { %82 = dma.hbm_to_vmem [thread:$0]  %s3549_s4, 1024, %s77_s28, [#allocation10], %s2740_s23, %s2740_s23, %s2741_s24  }
  0x54   :  { %2730 = dma.done.wait [#allocation4], 1024  }
  0x55   :  { %2731 = vsyncadd [#allocation4], 4294966272 }
  0x56   :  { %2732 = dma.done.wait [#allocation7], 2048  }
  0x57   :  { %2733 = vsyncadd [#allocation7], 4294965248 }
  0x58   :  { %2734 = dma.done.wait [#allocation10], 2048  }
  0x59   :  { %2735 = vsyncadd [#allocation10], 4294965248  ;;  %v2414_v0 = vld [vmem:[#allocation8] sm:$0xff]   ;;  %v2415_v1 = vld [vmem:[#allocation8 + $0x8] sm:$0xff]   ;;  %v536_v48 = vlaneseq  ;;  %v2745_v52 = vmov 0.0  }
  0x5a   :  { %2211 = vmatprep.subr.bf16.mxu0 %v2414_v0  ;;  %v2416_v2 = vld [vmem:[#allocation8 + $0x10] sm:$0xff]   ;;  %v2417_v3 = vld [vmem:[#allocation8 + $0x18] sm:$0xff]   ;;  %v2422_v4 = vld [vmem:[#allocation6] sm:$0xff]  }
  0x5b   :  { %2212 = vmatpush3.bf16.msra.mxu0 %v2414_v0  ;;  %2227 = vmatprep.mubr.bf16.mxu0 %v2422_v4  ;;  %v2418_v5 = vld [vmem:[#allocation8 + $0x20] sm:$0xff]   ;;  %v2419_v6 = vld [vmem:[#allocation8 + $0x28] sm:$0xff]   ;;  %v2420_v7 = vld [vmem:[#allocation8 + $0x30] sm:$0xff]   ;;  %v2913_v49 = vand.u32 127, %v536_v48 }
  0x5c   :  { %2213 = vmatprep.subr.bf16.mxu0 %v2415_v1  ;;  %v2421_v8 = vld [vmem:[#allocation8 + $0x38] sm:$0xff]   ;;  %v2423_v9 = vld [vmem:[#allocation6 + $0x8] sm:$0xff]   ;;  %v2424_v10 = vld [vmem:[#allocation6 + $0x10] sm:$0xff]  }
  0x5d   :  { %v2425_v11 = vld [vmem:[#allocation6 + $0x18] sm:$0xff]   ;;  %v2426_v12 = vld [vmem:[#allocation6 + $0x20] sm:$0xff]   ;;  %v2427_v13 = vld [vmem:[#allocation6 + $0x28] sm:$0xff]   ;;  %vm538_vm0 = vcmp.lt.s32.totalorder %v2913_v49, 32  ;;  %vm1801_vm1 = vcmp.lt.s32.totalorder %v2913_v49, 8 }
  0x5e   :  { %v2428_v14 = vld [vmem:[#allocation6 + $0x30] sm:$0xff]   ;;  %v2429_v15 = vld [vmem:[#allocation6 + $0x38] sm:$0xff]   ;;  %v2430_v16 = vld [vmem:[#allocation3] sm:$0xff]   ;;  %v2920_v53 = vsel %vm538_vm0, 1.0, %v2745_v52 }
  0x5f   :  { %2214 = vmatpush3.bf16.msra.mxu0 %v2415_v1  ;;  %2259 = vmatprep.mubr.bf16.mxu1 %v2430_v16  ;;  %v2431_v41 = vld [vmem:[#allocation3 + $0x8] sm:$0xff]   ;;  %v2432_v42 = vld [vmem:[#allocation3 + $0x10] sm:$0xff]   ;;  %v2433_v43 = vld [vmem:[#allocation3 + $0x18] sm:$0xff]  }
  0x60   :  { %2215 = vmatprep.subr.bf16.mxu0 %v2416_v2  ;;  %v2434_v44 = vld [vmem:[#allocation3 + $0x20] sm:$0xff]   ;;  %v2435_v45 = vld [vmem:[#allocation3 + $0x28] sm:$0xff]   ;;  %v2436_v46 = vld [vmem:[#allocation3 + $0x30] sm:$0xff]  }
  0x61   :  { %v2437_v47 = vld [vmem:[#allocation3 + $0x38] sm:$0xff]   ;;  %v2065_v50 = vld [vmem:[%s3550_s5] ss:$0 sm:$0xff] }
  0x63   :  { %2216 = vmatpush3.bf16.msra.mxu0 %v2416_v2 }
  0x64   :  { %2217 = vmatprep.subr.bf16.mxu0 %v2417_v3 }
  0x67   :  { %2218 = vmatpush3.bf16.msra.mxu0 %v2417_v3 }
  0x68   :  { %2219 = vmatprep.subr.bf16.mxu0 %v2418_v5 }
  0x6b   :  { %2220 = vmatpush3.bf16.msra.mxu0 %v2418_v5 }
  0x6c   :  { %2221 = vmatprep.subr.bf16.mxu0 %v2419_v6 }
  0x6f   :  { %2222 = vmatpush3.bf16.msra.mxu0 %v2419_v6 }
  0x70   :  { %2223 = vmatprep.subr.bf16.mxu0 %v2420_v7 }
  0x73   :  { %2224 = vmatpush3.bf16.msra.mxu0 %v2420_v7 }
  0x74   :  { %2225 = vmatprep.subr.bf16.mxu0 %v2421_v8 }
  0x77   :  { %2226 = vmatpush3.bf16.msra.mxu0 %v2421_v8 }
  0x7a   :  { %2228 = vmatmul.mubr.bf16.vlgmr.msra.gmra.mrb[0].mxu0 %v2423_v9 }
  0x7b   :  { %2231 = vmatprep.mubr.bf16.mxu0 %v2424_v10 }
  0x82   :  { %2232 = vmatmul.mubr.bf16.gmra.mrb[4].mxu0 %v2425_v11 }
  0x83   :  { %2235 = vmatprep.mubr.bf16.mxu0 %v2426_v12 }
  0x8a   :  { %2236 = vmatmul.mubr.bf16.gmra.mrb[8].mxu0 %v2427_v13 }
  0x8b   :  { %2239 = vmatprep.mubr.bf16.mxu0 %v2428_v14 }
  0x92   :  { %2240 = vmatmul.mubr.bf16.gmra.mrb[12].mxu0 %v2429_v15 }
 0x14d   :  { %v2229_v17 = vpop.f32.mrb[0].mxu0 }
 0x14e   :  { %v295_v18 = vpop.f32.mrb[1].mxu0 }
 0x14f   :  { %v2230_v19 = vpop.f32.mrb[2].mxu0 }
 0x150   :  { %v359_v20 = vpack.c.bf16 %v2230_v19, %v2229_v17  ;;  %v298_v21 = vpop.f32.mrb[3].mxu0 }
 0x151   :  { %v358_v22 = vpack.c.bf16 %v298_v21, %v295_v18 }
 0x153   :  { %2243 = vmatprep.subr.bf16.mxu1 %v358_v22 }
 0x154   :  { %2244 = vmatpush3.bf16.msra.mxu1 %v358_v22 }
 0x155   :  { %v2233_v23 = vpop.f32.mrb[4].mxu0  ;;  %2245 = vmatprep.subr.bf16.mxu1 %v359_v20 }
 0x156   :  { %v311_v24 = vpop.f32.mrb[5].mxu0 }
 0x157   :  { %v2234_v25 = vpop.f32.mrb[6].mxu0 }
 0x158   :  { %v361_v26 = vpack.c.bf16 %v2234_v25, %v2233_v23  ;;  %v314_v27 = vpop.f32.mrb[7].mxu0  ;;  %2246 = vmatpush3.bf16.msra.mxu1 %v359_v20 }
 0x159   :  { %v360_v28 = vpack.c.bf16 %v314_v27, %v311_v24 }
 0x15b   :  { %2247 = vmatprep.subr.bf16.mxu1 %v360_v28 }
 0x15c   :  { %2248 = vmatpush3.bf16.msra.mxu1 %v360_v28 }
 0x15d   :  { %v2237_v29 = vpop.f32.mrb[8].mxu0  ;;  %2249 = vmatprep.subr.bf16.mxu1 %v361_v26 }
 0x15e   :  { %v327_v30 = vpop.f32.mrb[9].mxu0 }
 0x15f   :  { %v2238_v31 = vpop.f32.mrb[10].mxu0 }
 0x160   :  { %v363_v32 = vpack.c.bf16 %v2238_v31, %v2237_v29  ;;  %v330_v33 = vpop.f32.mrb[11].mxu0  ;;  %2250 = vmatpush3.bf16.msra.mxu1 %v361_v26 }
 0x161   :  { %v362_v34 = vpack.c.bf16 %v330_v33, %v327_v30 }
 0x163   :  { %2251 = vmatprep.subr.bf16.mxu1 %v362_v34 }
 0x164   :  { %2252 = vmatpush3.bf16.msra.mxu1 %v362_v34 }
 0x165   :  { %v2241_v35 = vpop.f32.mrb[12].mxu0  ;;  %2253 = vmatprep.subr.bf16.mxu1 %v363_v32 }
 0x166   :  { %v343_v36 = vpop.f32.mrb[13].mxu0 }
 0x167   :  { %v2242_v37 = vpop.f32.mrb[14].mxu0 }
 0x168   :  { %v365_v38 = vpack.c.bf16 %v2242_v37, %v2241_v35  ;;  %v346_v39 = vpop.f32.mrb[15].mxu0  ;;  %2254 = vmatpush3.bf16.msra.mxu1 %v363_v32 }
 0x169   :  { %v364_v40 = vpack.c.bf16 %v346_v39, %v343_v36 }
 0x16b   :  { %2255 = vmatprep.subr.bf16.mxu1 %v364_v40 }
 0x16c   :  { %2256 = vmatpush3.bf16.msra.mxu1 %v364_v40 }
 0x16d   :  { %2257 = vmatprep.subr.bf16.mxu1 %v365_v38 }
 0x170   :  { %2258 = vmatpush3.bf16.msra.mxu1 %v365_v38 }
 0x173   :  { %2260 = vmatmul.mubr.bf16.vlgmr.msra.gmra.mrb[0].mxu1 %v2431_v41 }
 0x174   :  { %2263 = vmatprep.mubr.bf16.mxu1 %v2432_v42 }
 0x17b   :  { %2264 = vmatmul.mubr.bf16.gmra.mrb[4].mxu1 %v2433_v43 }
 0x17c   :  { %2267 = vmatprep.mubr.bf16.mxu1 %v2434_v44 }
 0x183   :  { %2268 = vmatmul.mubr.bf16.gmra.mrb[8].mxu1 %v2435_v45 }
 0x184   :  { %2271 = vmatprep.mubr.bf16.mxu1 %v2436_v46 }
 0x18b   :  { %2272 = vmatmul.mubr.bf16.gmra.mrb[12].mxu1 %v2437_v47 }
 0x246   :  { %v2261_v51 = vpop.f32.mrb[0].mxu1 }
 0x247   :  { %v2922_v54 = vadd.f32 %v2261_v51, %v2065_v50  ;;  %v471_v55 = vpop.f32.mrb[1].mxu1 }
 0x248   :  { %v2924_v56 = vadd.f32 %v2065_v50, %v471_v55  ;;  %v2262_v57 = vpop.f32.mrb[2].mxu1 }
 0x249   :  { %v2926_v58 = vadd.f32 %v2262_v57, %v2065_v50  ;;  %v474_v59 = vpop.f32.mrb[3].mxu1  ;;  %v543_v60 = vmul.f32 %v2920_v53, %v2922_v54 }
 0x24a   :  { %v2930_v61 = vadd.f32 %v2065_v50, %v474_v59  ;;  %v541_v62 = vmul.f32 %v2920_v53, %v2924_v56 }
 0x24b   :  { %561 = vadd.xlane.f32.xlu1 %v543_v60  ;;  %v544_v63 = vmul.f32 %v2920_v53, %v2926_v58 }
 0x24c   :  { %557 = vadd.xlane.f32.xlu0 %v541_v62  ;;  %v542_v1 = vmul.f32 %v2920_v53, %v2930_v61 }
 0x24e   :  { %v2265_v0 = vpop.f32.mrb[4].mxu1 }
 0x24f   :  { %563 = vadd.xlane.f32.xlu1 %v544_v63  ;;  %v487_v2 = vpop.f32.mrb[5].mxu1  ;;  %v2940_v6 = vadd.f32 %v2265_v0, %v2065_v50 }
 0x250   :  { %v2938_v3 = vadd.f32 %v2065_v50, %v487_v2  ;;  %v2266_v4 = vpop.f32.mrb[6].mxu1  ;;  %559 = vadd.xlane.f32.xlu0 %v542_v1 }
 0x251   :  { %v490_v5 = vpop.f32.mrb[7].mxu1  ;;  %v2946_v9 = vadd.f32 %v2266_v4, %v2065_v50  ;;  %v547_v12 = vmul.f32 %v2920_v53, %v2940_v6 }
 0x252   :  { %v2942_v7 = vadd.f32 %v2065_v50, %v490_v5  ;;  %v545_v8 = vmul.f32 %v2920_v53, %v2938_v3 }
 0x253   :  { %v548_v16 = vmul.f32 %v2920_v53, %v2946_v9 }
 0x254   :  { %565 = vadd.xlane.f32.xlu0 %v545_v8  ;;  %v546_v10 = vmul.f32 %v2920_v53, %v2942_v7 }
 0x256   :  { %v2269_v11 = vpop.f32.mrb[8].mxu1  ;;  %567 = vadd.xlane.f32.xlu1 %v546_v10 }
 0x257   :  { %v503_v13 = vpop.f32.mrb[9].mxu1  ;;  %v2956_v18 = vadd.f32 %v2269_v11, %v2065_v50 }
 0x258   :  { %v2952_v14 = vadd.f32 %v2065_v50, %v503_v13  ;;  %v2270_v15 = vpop.f32.mrb[10].mxu1  ;;  %569 = vadd.xlane.f32.xlu0 %v547_v12 }
 0x259   :  { %v506_v17 = vpop.f32.mrb[11].mxu1  ;;  %v2962_v21 = vadd.f32 %v2270_v15, %v2065_v50  ;;  %v551_v24 = vmul.f32 %v2920_v53, %v2956_v18 }
 0x25a   :  { %v2958_v19 = vadd.f32 %v2065_v50, %v506_v17  ;;  %571 = vadd.xlane.f32.xlu1 %v548_v16  ;;  %v549_v20 = vmul.f32 %v2920_v53, %v2952_v14 }
 0x25b   :  { %v552_v28 = vmul.f32 %v2920_v53, %v2962_v21 }
 0x25c   :  { %573 = vadd.xlane.f32.xlu0 %v549_v20  ;;  %v550_v22 = vmul.f32 %v2920_v53, %v2958_v19 }
 0x25e   :  { %v2273_v23 = vpop.f32.mrb[12].mxu1  ;;  %575 = vadd.xlane.f32.xlu1 %v550_v22 }
 0x25f   :  { %v519_v25 = vpop.f32.mrb[13].mxu1  ;;  %v2972_v30 = vadd.f32 %v2273_v23, %v2065_v50 }
 0x260   :  { %v2968_v26 = vadd.f32 %v2065_v50, %v519_v25  ;;  %v2274_v27 = vpop.f32.mrb[14].mxu1  ;;  %577 = vadd.xlane.f32.xlu0 %v551_v24 }
 0x261   :  { %v522_v29 = vpop.f32.mrb[15].mxu1  ;;  %v2978_v33 = vadd.f32 %v2274_v27, %v2065_v50  ;;  %v555_v35 = vmul.f32 %v2920_v53, %v2972_v30 }
 0x262   :  { %v2974_v31 = vadd.f32 %v2065_v50, %v522_v29  ;;  %579 = vadd.xlane.f32.xlu1 %v552_v28  ;;  %v553_v32 = vmul.f32 %v2920_v53, %v2968_v26 }
 0x263   :  { %v556_v36 = vmul.f32 %v2920_v53, %v2978_v33 }
 0x264   :  { %581 = vadd.xlane.f32.xlu0 %v553_v32  ;;  %v554_v34 = vmul.f32 %v2920_v53, %v2974_v31 }
 0x266   :  { %583 = vadd.xlane.f32.xlu1 %v554_v34  ;;  %v2438_v34 = vld [vmem:[#allocation9] sm:$0xff]  }
 0x267   :  { %2275 = vmatprep.subr.bf16.mxu0 %v2438_v34 }
 0x268   :  { %585 = vadd.xlane.f32.xlu0 %v555_v35  ;;  %2276 = vmatpush3.bf16.msra.mxu0 %v2438_v34 }
 0x26a   :  { %587 = vadd.xlane.f32.xlu1 %v556_v36 }
 0x2d8   :  { %v562_v37 = vpop.xlane.xlu1 %561 }
 0x2d9   :  { %v591_v38 = vmul.f32 0.03125, %v562_v37  ;;  %v558_v39 = vpop.xlane.xlu0 %557 }
 0x2da   :  { %v589_v40 = vmul.f32 0.03125, %v558_v39 }
 0x2db   :  { %v2987_v41 = vsub.f32 %v2922_v54, %v591_v38 }
 0x2dc   :  { %v2990_v42 = vsub.f32 %v2924_v56, %v589_v40  ;;  %v564_v43 = vpop.xlane.xlu1 %563 }
 0x2dd   :  { %v592_v44 = vmul.f32 0.03125, %v564_v43  ;;  %v560_v45 = vpop.xlane.xlu0 %559  ;;  %v623_v54 = vmul.f32 %v2920_v53, %v2987_v41 }
 0x2de   :  { %v590_v46 = vmul.f32 0.03125, %v560_v45  ;;  %v621_v47 = vmul.f32 %v2920_v53, %v2990_v42 }
 0x2df   :  { %v2995_v48 = vsub.f32 %v2926_v58, %v592_v44 }
 0x2e0   :  { %v2998_v50 = vsub.f32 %v2930_v61, %v590_v46  ;;  %v637_v51 = vmul.f32 %v621_v47, %v621_v47  ;;  %v639_v61 = vmul.f32 %v623_v54, %v623_v54 }
 0x2e1   :  { %v566_v55 = vpop.xlane.xlu0 %565  ;;  %v624_v60 = vmul.f32 %v2920_v53, %v2995_v48 }
 0x2e2   :  { %v593_v56 = vmul.f32 0.03125, %v566_v55  ;;  %653 = vadd.xlane.f32.xlu0 %v637_v51  ;;  %v622_v57 = vmul.f32 %v2920_v53, %v2998_v50  ;;  %v2439_v51 = vld [vmem:[#allocation9 + $0x8] sm:$0xff]  }
 0x2e3   :  { %v568_v59 = vpop.xlane.xlu1 %567  ;;  %v640_v8 = vmul.f32 %v624_v60, %v624_v60  ;;  %2277 = vmatprep.subr.bf16.mxu0 %v2439_v51 }
 0x2e4   :  { %v3007_v58 = vsub.f32 %v2938_v3, %v593_v56  ;;  %v594_v62 = vmul.f32 0.03125, %v568_v59  ;;  %v638_v63 = vmul.f32 %v622_v57, %v622_v57  ;;  %2278 = vmatpush3.bf16.msra.mxu0 %v2439_v51 }
 0x2e5   :  { %v570_v0 = vpop.xlane.xlu0 %569 }
 0x2e6   :  { %v3010_v1 = vsub.f32 %v2942_v7, %v594_v62  ;;  %v595_v2 = vmul.f32 0.03125, %v570_v0  ;;  %657 = vadd.xlane.f32.xlu0 %v639_v61  ;;  %655 = vadd.xlane.f32.xlu1 %v638_v63  ;;  %v625_v4 = vmul.f32 %v2920_v53, %v3007_v58 }
 0x2e7   :  { %v572_v5 = vpop.xlane.xlu1 %571 }
 0x2e8   :  { %v3015_v10 = vsub.f32 %v2940_v6, %v595_v2  ;;  %v596_v3 = vmul.f32 0.03125, %v572_v5  ;;  %v641_v11 = vmul.f32 %v625_v4, %v625_v4  ;;  %v626_v12 = vmul.f32 %v2920_v53, %v3010_v1  ;;  %v2441_v5 = vld [vmem:[#allocation9 + $0x18] sm:$0xff]  }
 0x2e9   :  { %v574_v13 = vpop.xlane.xlu0 %573 }
 0x2ea   :  { %v3020_v7 = vsub.f32 %v2946_v9, %v596_v3  ;;  %v597_v15 = vmul.f32 0.03125, %v574_v13  ;;  %659 = vadd.xlane.f32.xlu1 %v640_v8  ;;  %661 = vadd.xlane.f32.xlu0 %v641_v11  ;;  %v627_v16 = vmul.f32 %v2920_v53, %v3015_v10  ;;  %v642_v20 = vmul.f32 %v626_v12, %v626_v12  ;;  %v2443_v3 = vld [vmem:[#allocation9 + $0x28] sm:$0xff]   ;;  %v2444_v11 = vld [vmem:[#allocation9 + $0x30] sm:$0xff]   ;;  %v2445_v12 = vld [vmem:[#allocation9 + $0x38] sm:$0xff]  }
 0x2eb   :  { %v576_v17 = vpop.xlane.xlu1 %575 }
 0x2ec   :  { %v3025_v6 = vsub.f32 %v2952_v14, %v597_v15  ;;  %v598_v22 = vmul.f32 0.03125, %v576_v17  ;;  %v643_v23 = vmul.f32 %v627_v16, %v627_v16  ;;  %v628_v24 = vmul.f32 %v2920_v53, %v3020_v7 }
 0x2ed   :  { %v578_v25 = vpop.xlane.xlu0 %577 }
 0x2ee   :  { %v3030_v9 = vsub.f32 %v2958_v19, %v598_v22  ;;  %v599_v27 = vmul.f32 0.03125, %v578_v25  ;;  %663 = vadd.xlane.f32.xlu1 %v642_v20  ;;  %665 = vadd.xlane.f32.xlu0 %v643_v23  ;;  %v629_v28 = vmul.f32 %v2920_v53, %v3025_v6  ;;  %v644_v32 = vmul.f32 %v628_v24, %v628_v24 }
 0x2ef   :  { %v580_v29 = vpop.xlane.xlu1 %579 }
 0x2f0   :  { %v3035_v14 = vsub.f32 %v2956_v18, %v599_v27  ;;  %v600_v35 = vmul.f32 0.03125, %v580_v29  ;;  %v645_v36 = vmul.f32 %v629_v28, %v629_v28  ;;  %v630_v37 = vmul.f32 %v2920_v53, %v3030_v9 }
 0x2f1   :  { %v582_v38 = vpop.xlane.xlu0 %581 }
 0x2f2   :  { %v3040_v19 = vsub.f32 %v2962_v21, %v600_v35  ;;  %v601_v39 = vmul.f32 0.03125, %v582_v38  ;;  %667 = vadd.xlane.f32.xlu1 %v644_v32  ;;  %669 = vadd.xlane.f32.xlu0 %v645_v36  ;;  %v631_v40 = vmul.f32 %v2920_v53, %v3035_v14  ;;  %v646_v44 = vmul.f32 %v630_v37, %v630_v37 }
 0x2f3   :  { %v584_v43 = vpop.xlane.xlu1 %583 }
 0x2f4   :  { %v3045_v18 = vsub.f32 %v2968_v26, %v601_v39  ;;  %v602_v45 = vmul.f32 0.03125, %v584_v43  ;;  %v647_v46 = vmul.f32 %v631_v40, %v631_v40  ;;  %v632_v47 = vmul.f32 %v2920_v53, %v3040_v19  ;;  %v3069_v43 = vld [vmem:[%s3554_s9] ss:$0 sm:$0xff] }
 0x2f5   :  { %v586_v21 = vpop.xlane.xlu0 %585 }
 0x2f6   :  { %v3050_v54 = vsub.f32 %v2974_v31, %v602_v45  ;;  %v603_v55 = vmul.f32 0.03125, %v586_v21  ;;  %671 = vadd.xlane.f32.xlu1 %v646_v44  ;;  %673 = vadd.xlane.f32.xlu0 %v647_v46  ;;  %v633_v56 = vmul.f32 %v2920_v53, %v3045_v18  ;;  %v648_v59 = vmul.f32 %v632_v47, %v632_v47  ;;  %v2440_v31 = vld [vmem:[#allocation9 + $0x10] sm:$0xff]  }
 0x2f7   :  { %v588_v57 = vpop.xlane.xlu1 %587  ;;  %2279 = vmatprep.subr.bf16.mxu0 %v2440_v31 }
 0x2f8   :  { %v3055_v26 = vsub.f32 %v2972_v30, %v603_v55  ;;  %v604_v60 = vmul.f32 0.03125, %v588_v57  ;;  %v649_v62 = vmul.f32 %v633_v56, %v633_v56  ;;  %v634_v61 = vmul.f32 %v2920_v53, %v3050_v54  ;;  %2280 = vmatpush3.bf16.msra.mxu0 %v2440_v31  ;;  %v3075_v56 = vld [vmem:[%s3557_s12] ss:$0 sm:$0xff] }
 0x2f9   :  { %2281 = vmatprep.subr.bf16.mxu0 %v2441_v5 }
 0x2fa   :  { %v3060_v63 = vsub.f32 %v2978_v33, %v604_v60  ;;  %675 = vadd.xlane.f32.xlu1 %v648_v59  ;;  %677 = vadd.xlane.f32.xlu0 %v649_v62  ;;  %v635_v0 = vmul.f32 %v2920_v53, %v3055_v26  ;;  %v650_v2 = vmul.f32 %v634_v61, %v634_v61  ;;  %v2442_v33 = vld [vmem:[#allocation9 + $0x20] sm:$0xff]  }
 0x2fc   :  { %v651_v4 = vmul.f32 %v635_v0, %v635_v0  ;;  %v636_v30 = vmul.f32 %v2920_v53, %v3060_v63  ;;  %2282 = vmatpush3.bf16.msra.mxu0 %v2441_v5 }
 0x2fd   :  { %2283 = vmatprep.subr.bf16.mxu0 %v2442_v33 }
 0x2fe   :  { %679 = vadd.xlane.f32.xlu1 %v650_v2  ;;  %681 = vadd.xlane.f32.xlu0 %v651_v4  ;;  %v652_v8 = vmul.f32 %v636_v30, %v636_v30 }
 0x300   :  { %2284 = vmatpush3.bf16.msra.mxu0 %v2442_v33 }
 0x301   :  { %2285 = vmatprep.subr.bf16.mxu0 %v2443_v3 }
 0x302   :  { %683 = vadd.xlane.f32.xlu1 %v652_v8 }
 0x304   :  { %2286 = vmatpush3.bf16.msra.mxu0 %v2443_v3 }
 0x305   :  { %2287 = vmatprep.subr.bf16.mxu0 %v2444_v11 }
 0x308   :  { %2288 = vmatpush3.bf16.msra.mxu0 %v2444_v11 }
 0x309   :  { %2289 = vmatprep.subr.bf16.mxu0 %v2445_v12 }
 0x30c   :  { %2290 = vmatpush3.bf16.msra.mxu0 %v2445_v12 }
 0x36f   :  { %v654_v13 = vpop.xlane.xlu0 %653 }
 0x370   :  { %v685_v15 = vmul.f32 0.03125, %v654_v13 }
 0x372   :  { %v701_v16 = vadd.f32 1e-05, %v685_v15 }
 0x373   :  { %v656_v17 = vpop.xlane.xlu1 %655  ;;  %v658_v20 = vpop.xlane.xlu0 %657 }
 0x374   :  { %2470 = vrsqrt.f32 %v701_v16  ;;  %v686_v22 = vmul.f32 0.03125, %v656_v17  ;;  %v687_v23 = vmul.f32 0.03125, %v658_v20 }
 0x376   :  { %v702_v24 = vadd.f32 1e-05, %v686_v22  ;;  %v703_v25 = vadd.f32 1e-05, %v687_v23 }
 0x377   :  { %v660_v27 = vpop.xlane.xlu1 %659  ;;  %v662_v28 = vpop.xlane.xlu0 %661 }
 0x378   :  { %2472 = vrsqrt.f32 %v702_v24  ;;  %v688_v29 = vmul.f32 0.03125, %v660_v27  ;;  %v689_v32 = vmul.f32 0.03125, %v662_v28 }
 0x379   :  { %2474 = vrsqrt.f32 %v703_v25 }
 0x37a   :  { %v704_v34 = vadd.f32 1e-05, %v688_v29  ;;  %v705_v35 = vadd.f32 1e-05, %v689_v32 }
 0x37b   :  { %v664_v36 = vpop.xlane.xlu1 %663  ;;  %v666_v37 = vpop.xlane.xlu0 %665 }
 0x37c   :  { %2476 = vrsqrt.f32 %v704_v34  ;;  %v690_v38 = vmul.f32 0.03125, %v664_v36  ;;  %v691_v39 = vmul.f32 0.03125, %v666_v37 }
 0x37d   :  { %2478 = vrsqrt.f32 %v705_v35 }
 0x37e   :  { %v2471_v40 = vpop.eup %2470  ;;  %v706_v44 = vadd.f32 1e-05, %v690_v38  ;;  %v707_v45 = vadd.f32 1e-05, %v691_v39 }
 0x37f   :  { %v668_v46 = vpop.xlane.xlu1 %667  ;;  %v670_v47 = vpop.xlane.xlu0 %669  ;;  %v733_v51 = vmul.f32 %v2471_v40, %v2990_v42 }
 0x380   :  { %2480 = vrsqrt.f32 %v706_v44  ;;  %v692_v21 = vmul.f32 0.03125, %v668_v46  ;;  %v693_v55 = vmul.f32 0.03125, %v670_v47 }
 0x381   :  { %2482 = vrsqrt.f32 %v707_v45  ;;  %v755_v57 = vmul.f32 %v3069_v43, %v733_v51 }
 0x382   :  { %v2473_v59 = vpop.eup %2472  ;;  %v708_v60 = vadd.f32 1e-05, %v692_v21  ;;  %v709_v62 = vadd.f32 1e-05, %v693_v55 }
 0x383   :  { %v2475_v61 = vpop.eup %2474  ;;  %v672_v31 = vpop.xlane.xlu1 %671  ;;  %v734_v2 = vmul.f32 %v2473_v59, %v2998_v50  ;;  %v777_v42 = vadd.f32 %v3075_v56, %v755_v57 }
 0x384   :  { %v674_v0 = vpop.xlane.xlu0 %673  ;;  %v735_v4 = vmul.f32 %v2475_v61, %v2987_v41  ;;  %2484 = vrsqrt.f32 %v708_v60  ;;  %v694_v30 = vmul.f32 0.03125, %v672_v31 }
 0x385   :  { %v695_v5 = vmul.f32 0.03125, %v674_v0  ;;  %2486 = vrsqrt.f32 %v709_v62  ;;  %v756_v8 = vmul.f32 %v3069_v43, %v734_v2  ;;  %v793_v20 = vmax.f32 %v777_v42, 0.0 }
 0x386   :  { %v2477_v33 = vpop.eup %2476  ;;  %v757_v3 = vmul.f32 %v3069_v43, %v735_v4  ;;  %v710_v11 = vadd.f32 1e-05, %v694_v30 }
 0x387   :  { %v711_v12 = vadd.f32 1e-05, %v695_v5  ;;  %v2479_v13 = vpop.eup %2478  ;;  %v736_v15 = vmul.f32 %v2477_v33, %v2995_v48  ;;  %v676_v16 = vpop.xlane.xlu1 %675  ;;  %v778_v17 = vadd.f32 %v3075_v56, %v756_v8 }
 0x388   :  { %v678_v50 = vpop.xlane.xlu0 %677  ;;  %2488 = vrsqrt.f32 %v710_v11  ;;  %v696_v41 = vmul.f32 0.03125, %v676_v16  ;;  %v779_v23 = vadd.f32 %v3075_v56, %v757_v3  ;;  %v737_v27 = vmul.f32 %v2479_v13, %v3007_v58 }
 0x389   :  { %v697_v22 = vmul.f32 0.03125, %v678_v50  ;;  %v758_v24 = vmul.f32 %v3069_v43, %v736_v15  ;;  %2490 = vrsqrt.f32 %v711_v12  ;;  %v794_v25 = vmax.f32 %v778_v17, 0.0 }
 0x38a   :  { %v2481_v28 = vpop.eup %2480  ;;  %v712_v29 = vadd.f32 1e-05, %v696_v41  ;;  %v795_v48 = vmax.f32 %v779_v23, 0.0  ;;  %v759_v40 = vmul.f32 %v3069_v43, %v737_v27 }
 0x38b   :  { %v713_v32 = vadd.f32 1e-05, %v697_v22  ;;  %v2483_v34 = vpop.eup %2482  ;;  %v680_v35 = vpop.xlane.xlu1 %679  ;;  %v809_v37 = vpack.c.bf16 %v794_v25, %v793_v20  ;;  %v780_v38 = vadd.f32 %v3075_v56, %v758_v24  ;;  %v738_v39 = vmul.f32 %v2481_v28, %v3010_v1 }
 0x38c   :  { %v682_v36 = vpop.xlane.xlu0 %681  ;;  %2492 = vrsqrt.f32 %v712_v29  ;;  %v698_v44 = vmul.f32 0.03125, %v680_v35  ;;  %v739_v46 = vmul.f32 %v2483_v34, %v3015_v10  ;;  %v781_v51 = vadd.f32 %v3075_v56, %v759_v40 }
 0x38d   :  { %v699_v45 = vmul.f32 0.03125, %v682_v36  ;;  %2494 = vrsqrt.f32 %v713_v32  ;;  %2291 = vmatprep.mubr.bf16.mxu0 %v809_v37  ;;  %v796_v58 = vmax.f32 %v780_v38, 0.0  ;;  %v760_v47 = vmul.f32 %v3069_v43, %v738_v39 }
 0x38e   :  { %v2485_v21 = vpop.eup %2484  ;;  %v714_v55 = vadd.f32 1e-05, %v698_v44  ;;  %v761_v59 = vmul.f32 %v3069_v43, %v739_v46  ;;  %v797_v0 = vmax.f32 %v781_v51, 0.0 }
 0x38f   :  { %v715_v57 = vadd.f32 1e-05, %v699_v45  ;;  %v2487_v1 = vpop.eup %2486  ;;  %v684_v60 = vpop.xlane.xlu1 %683  ;;  %v810_v62 = vpack.c.bf16 %v796_v58, %v795_v48  ;;  %v782_v61 = vadd.f32 %v3075_v56, %v760_v47  ;;  %v740_v31 = vmul.f32 %v2485_v21, %v3020_v7 }
 0x390   :  { %2496 = vrsqrt.f32 %v714_v55  ;;  %v700_v10 = vmul.f32 0.03125, %v684_v60  ;;  %v741_v2 = vmul.f32 %v2487_v1, %v3025_v6  ;;  %v783_v30 = vadd.f32 %v3075_v56, %v761_v59  ;;  %v2446_v60 = vld [vmem:[#allocation3] sm:$0xff]  }
 0x391   :  { %2498 = vrsqrt.f32 %v715_v57  ;;  %2292 = vmatmul.mubr.bf16.vlgmr.msra.gmra.mrb[16].mxu0 %v810_v62  ;;  %v798_v42 = vmax.f32 %v782_v61, 0.0  ;;  %v762_v4 = vmul.f32 %v3069_v43, %v740_v31  ;;  %2323 = vmatprep.mubr.bf16.mxu1 %v2446_v60 }
 0x392   :  { %v2489_v5 = vpop.eup %2488  ;;  %v716_v8 = vadd.f32 1e-05, %v700_v10  ;;  %v763_v33 = vmul.f32 %v3069_v43, %v741_v2  ;;  %v799_v13 = vmax.f32 %v783_v30, 0.0 }
 0x393   :  { %v2491_v3 = vpop.eup %2490  ;;  %v811_v11 = vpack.c.bf16 %v798_v42, %v797_v0  ;;  %v784_v7 = vadd.f32 %v3075_v56, %v762_v4  ;;  %v742_v12 = vmul.f32 %v2489_v5, %v3030_v9 }
 0x394   :  { %2500 = vrsqrt.f32 %v716_v8  ;;  %v743_v6 = vmul.f32 %v2491_v3, %v3035_v14  ;;  %v785_v50 = vadd.f32 %v3075_v56, %v763_v33 }
 0x395   :  { %2295 = vmatprep.mubr.bf16.mxu0 %v811_v11  ;;  %v800_v15 = vmax.f32 %v784_v7, 0.0  ;;  %v764_v16 = vmul.f32 %v3069_v43, %v742_v12 }
 0x396   :  { %v2493_v17 = vpop.eup %2492  ;;  %v765_v20 = vmul.f32 %v3069_v43, %v743_v6  ;;  %v801_v14 = vmax.f32 %v785_v50, 0.0 }
 0x397   :  { %v2495_v41 = vpop.eup %2494  ;;  %v812_v22 = vpack.c.bf16 %v800_v15, %v799_v13  ;;  %v786_v23 = vadd.f32 %v3075_v56, %v764_v16  ;;  %v744_v24 = vmul.f32 %v2493_v17, %v3040_v19  ;;  %v2447_v17 = vld [vmem:[#allocation3 + $0x8] sm:$0xff]  }
 0x398   :  { %v745_v9 = vmul.f32 %v2495_v41, %v3045_v18  ;;  %v787_v28 = vadd.f32 %v3075_v56, %v765_v20  ;;  %v2448_v20 = vld [vmem:[#allocation3 + $0x10] sm:$0xff]   ;;  %v2449_v41 = vld [vmem:[#allocation3 + $0x18] sm:$0xff]  }
 0x399   :  { %2296 = vmatmul.mubr.bf16.gmra.mrb[20].mxu0 %v812_v22  ;;  %v802_v25 = vmax.f32 %v786_v23, 0.0  ;;  %v766_v27 = vmul.f32 %v3069_v43, %v744_v24  ;;  %v2450_v22 = vld [vmem:[#allocation3 + $0x20] sm:$0xff]   ;;  %v2451_v23 = vld [vmem:[#allocation3 + $0x28] sm:$0xff]   ;;  %v2452_v24 = vld [vmem:[#allocation3 + $0x30] sm:$0xff]  }
 0x39a   :  { %v2497_v29 = vpop.eup %2496  ;;  %v767_v32 = vmul.f32 %v3069_v43, %v745_v9  ;;  %v803_v18 = vmax.f32 %v787_v28, 0.0  ;;  %v2453_v9 = vld [vmem:[#allocation3 + $0x38] sm:$0xff]  }
 0x39b   :  { %v2499_v48 = vpop.eup %2498  ;;  %v813_v34 = vpack.c.bf16 %v802_v25, %v801_v14  ;;  %v788_v35 = vadd.f32 %v3075_v56, %v766_v27  ;;  %v746_v36 = vmul.f32 %v2497_v29, %v3050_v54  ;;  %v2085_v14 = vld [vmem:[%s3551_s6] ss:$0 sm:$0xff] }
 0x39c   :  { %v747_v19 = vmul.f32 %v2499_v48, %v3055_v26  ;;  %v789_v39 = vadd.f32 %v3075_v56, %v767_v32 }
 0x39d   :  { %2299 = vmatprep.mubr.bf16.mxu0 %v813_v34  ;;  %v804_v37 = vmax.f32 %v788_v35, 0.0  ;;  %v768_v38 = vmul.f32 %v3069_v43, %v746_v36 }
 0x39e   :  { %v2501_v40 = vpop.eup %2500  ;;  %v769_v44 = vmul.f32 %v3069_v43, %v747_v19  ;;  %v805_v47 = vmax.f32 %v789_v39, 0.0 }
 0x39f   :  { %v814_v45 = vpack.c.bf16 %v804_v37, %v803_v18  ;;  %v790_v46 = vadd.f32 %v3075_v56, %v768_v38  ;;  %v748_v58 = vmul.f32 %v2501_v40, %v3060_v63 }
 0x3a0   :  { %v791_v51 = vadd.f32 %v3075_v56, %v769_v44 }
 0x3a1   :  { %2300 = vmatmul.mubr.bf16.gmra.mrb[24].mxu0 %v814_v45  ;;  %v806_v54 = vmax.f32 %v790_v46, 0.0  ;;  %v770_v26 = vmul.f32 %v3069_v43, %v748_v58 }
 0x3a2   :  { %v807_v57 = vmax.f32 %v791_v51, 0.0 }
 0x3a3   :  { %v815_v21 = vpack.c.bf16 %v806_v54, %v805_v47  ;;  %v792_v55 = vadd.f32 %v3075_v56, %v770_v26 }
 0x3a5   :  { %2303 = vmatprep.mubr.bf16.mxu0 %v815_v21  ;;  %v808_v59 = vmax.f32 %v792_v55, 0.0 }
 0x3a7   :  { %v816_v1 = vpack.c.bf16 %v808_v59, %v807_v57 }
 0x3a9   :  { %2304 = vmatmul.mubr.bf16.gmra.mrb[28].mxu0 %v816_v1 }
 0x464   :  { %v2293_v62 = vpop.f32.mrb[16].mxu0 }
 0x465   :  { %v931_v61 = vpop.f32.mrb[17].mxu0 }
 0x466   :  { %v2294_v63 = vpop.f32.mrb[18].mxu0 }
 0x467   :  { %v995_v31 = vpack.c.bf16 %v2294_v63, %v2293_v62  ;;  %v934_v10 = vpop.f32.mrb[19].mxu0 }
 0x468   :  { %v994_v0 = vpack.c.bf16 %v934_v10, %v931_v61 }
 0x46a   :  { %2307 = vmatprep.subr.bf16.mxu1 %v994_v0 }
 0x46b   :  { %2308 = vmatpush3.bf16.msra.mxu1 %v994_v0 }
 0x46c   :  { %v2297_v43 = vpop.f32.mrb[20].mxu0  ;;  %2309 = vmatprep.subr.bf16.mxu1 %v995_v31 }
 0x46d   :  { %v947_v2 = vpop.f32.mrb[21].mxu0 }
 0x46e   :  { %v2298_v42 = vpop.f32.mrb[22].mxu0 }
 0x46f   :  { %v997_v56 = vpack.c.bf16 %v2298_v42, %v2297_v43  ;;  %v950_v4 = vpop.f32.mrb[23].mxu0  ;;  %2310 = vmatpush3.bf16.msra.mxu1 %v995_v31 }
 0x470   :  { %v996_v30 = vpack.c.bf16 %v950_v4, %v947_v2 }
 0x472   :  { %2311 = vmatprep.subr.bf16.mxu1 %v996_v30 }
 0x473   :  { %2312 = vmatpush3.bf16.msra.mxu1 %v996_v30 }
 0x474   :  { %v2301_v5 = vpop.f32.mrb[24].mxu0  ;;  %2313 = vmatprep.subr.bf16.mxu1 %v997_v56 }
 0x475   :  { %v963_v8 = vpop.f32.mrb[25].mxu0 }
 0x476   :  { %v2302_v33 = vpop.f32.mrb[26].mxu0 }
 0x477   :  { %v999_v3 = vpack.c.bf16 %v2302_v33, %v2301_v5  ;;  %v966_v11 = vpop.f32.mrb[27].mxu0  ;;  %2314 = vmatpush3.bf16.msra.mxu1 %v997_v56 }
 0x478   :  { %v998_v7 = vpack.c.bf16 %v966_v11, %v963_v8 }
 0x47a   :  { %2315 = vmatprep.subr.bf16.mxu1 %v998_v7 }
 0x47b   :  { %2316 = vmatpush3.bf16.msra.mxu1 %v998_v7 }
 0x47c   :  { %v2305_v12 = vpop.f32.mrb[28].mxu0  ;;  %2317 = vmatprep.subr.bf16.mxu1 %v999_v3 }
 0x47d   :  { %v979_v6 = vpop.f32.mrb[29].mxu0 }
 0x47e   :  { %v2306_v13 = vpop.f32.mrb[30].mxu0 }
 0x47f   :  { %v1001_v15 = vpack.c.bf16 %v2306_v13, %v2305_v12  ;;  %v982_v16 = vpop.f32.mrb[31].mxu0  ;;  %2318 = vmatpush3.bf16.msra.mxu1 %v999_v3 }
 0x480   :  { %v1000_v50 = vpack.c.bf16 %v982_v16, %v979_v6  ;;  %v2454_v6 = vld [vmem:[#allocation11] sm:$0xff]  }
 0x481   :  { %2339 = vmatprep.subr.bf16.mxu0 %v2454_v6 }
 0x482   :  { %2319 = vmatprep.subr.bf16.mxu1 %v1000_v50  ;;  %2340 = vmatpush3.bf16.msra.mxu0 %v2454_v6 }
 0x483   :  { %2320 = vmatpush3.bf16.msra.mxu1 %v1000_v50 }
 0x484   :  { %2321 = vmatprep.subr.bf16.mxu1 %v1001_v15 }
 0x487   :  { %2322 = vmatpush3.bf16.msra.mxu1 %v1001_v15 }
 0x48a   :  { %2324 = vmatmul.mubr.bf16.vlgmr.msra.gmra.mrb[16].mxu1 %v2447_v17 }
 0x48b   :  { %2327 = vmatprep.mubr.bf16.mxu1 %v2448_v20 }
 0x492   :  { %2328 = vmatmul.mubr.bf16.gmra.mrb[20].mxu1 %v2449_v41 }
 0x493   :  { %2331 = vmatprep.mubr.bf16.mxu1 %v2450_v22 }
 0x49a   :  { %2332 = vmatmul.mubr.bf16.gmra.mrb[24].mxu1 %v2451_v23 }
 0x49b   :  { %2335 = vmatprep.mubr.bf16.mxu1 %v2452_v24 }
 0x4a2   :  { %2336 = vmatmul.mubr.bf16.gmra.mrb[28].mxu1 %v2453_v9 }
 0x55d   :  { %v2325_v25 = vpop.f32.mrb[16].mxu1 }
 0x55e   :  { %v1107_v27 = vpop.f32.mrb[17].mxu1  ;;  %v3129_v48 = vadd.f32 %v2325_v25, %v2085_v14 }
 0x55f   :  { %v3127_v28 = vadd.f32 %v2085_v14, %v1107_v27  ;;  %v2326_v29 = vpop.f32.mrb[18].mxu1 }
 0x560   :  { %v1110_v32 = vpop.f32.mrb[19].mxu1  ;;  %v3135_v36 = vadd.f32 %v2326_v29, %v2085_v14  ;;  %v1174_v37 = vmul.f32 %v2920_v53, %v3129_v48 }
 0x561   :  { %v3131_v34 = vadd.f32 %v2085_v14, %v1110_v32  ;;  %v1172_v35 = vmul.f32 %v2920_v53, %v3127_v28 }
 0x562   :  { %v1175_v44 = vmul.f32 %v2920_v53, %v3135_v36 }
 0x563   :  { %1188 = vadd.xlane.f32.xlu0 %v1172_v35  ;;  %v1173_v19 = vmul.f32 %v2920_v53, %v3131_v34 }
 0x565   :  { %v2329_v18 = vpop.f32.mrb[20].mxu1  ;;  %1190 = vadd.xlane.f32.xlu1 %v1173_v19 }
 0x566   :  { %v1123_v38 = vpop.f32.mrb[21].mxu1  ;;  %v3145_v46 = vadd.f32 %v2329_v18, %v2085_v14 }
 0x567   :  { %v3141_v39 = vadd.f32 %v2085_v14, %v1123_v38  ;;  %v2330_v40 = vpop.f32.mrb[22].mxu1  ;;  %1192 = vadd.xlane.f32.xlu0 %v1174_v37 }
 0x568   :  { %v1126_v45 = vpop.f32.mrb[23].mxu1  ;;  %v3151_v54 = vadd.f32 %v2330_v40, %v2085_v14  ;;  %v1178_v21 = vmul.f32 %v2920_v53, %v3145_v46 }
 0x569   :  { %v3147_v58 = vadd.f32 %v2085_v14, %v1126_v45  ;;  %1194 = vadd.xlane.f32.xlu1 %v1175_v44  ;;  %v1176_v47 = vmul.f32 %v2920_v53, %v3141_v39 }
 0x56a   :  { %v1179_v1 = vmul.f32 %v2920_v53, %v3151_v54 }
 0x56b   :  { %1196 = vadd.xlane.f32.xlu0 %v1176_v47  ;;  %v1177_v26 = vmul.f32 %v2920_v53, %v3147_v58 }
 0x56d   :  { %v2333_v51 = vpop.f32.mrb[24].mxu1  ;;  %1198 = vadd.xlane.f32.xlu1 %v1177_v26 }
 0x56e   :  { %v1139_v55 = vpop.f32.mrb[25].mxu1  ;;  %v3161_v62 = vadd.f32 %v2333_v51, %v2085_v14 }
 0x56f   :  { %v3157_v57 = vadd.f32 %v2085_v14, %v1139_v55  ;;  %v2334_v59 = vpop.f32.mrb[26].mxu1  ;;  %1200 = vadd.xlane.f32.xlu0 %v1178_v21 }
 0x570   :  { %v1142_v60 = vpop.f32.mrb[27].mxu1  ;;  %v3167_v31 = vadd.f32 %v2334_v59, %v2085_v14  ;;  %v1182_v43 = vmul.f32 %v2920_v53, %v3161_v62 }
 0x571   :  { %v3163_v61 = vadd.f32 %v2085_v14, %v1142_v60  ;;  %1202 = vadd.xlane.f32.xlu1 %v1179_v1  ;;  %v1180_v63 = vmul.f32 %v2920_v53, %v3157_v57 }
 0x572   :  { %v1183_v4 = vmul.f32 %v2920_v53, %v3167_v31 }
 0x573   :  { %1204 = vadd.xlane.f32.xlu0 %v1180_v63  ;;  %v1181_v10 = vmul.f32 %v2920_v53, %v3163_v61 }
 0x575   :  { %v2337_v0 = vpop.f32.mrb[28].mxu1  ;;  %1206 = vadd.xlane.f32.xlu1 %v1181_v10 }
 0x576   :  { %v1155_v2 = vpop.f32.mrb[29].mxu1  ;;  %v3177_v5 = vadd.f32 %v2337_v0, %v2085_v14 }
 0x577   :  { %v3173_v42 = vadd.f32 %v2085_v14, %v1155_v2  ;;  %v2338_v56 = vpop.f32.mrb[30].mxu1  ;;  %1208 = vadd.xlane.f32.xlu0 %v1182_v43 }
 0x578   :  { %v1158_v30 = vpop.f32.mrb[31].mxu1  ;;  %v3183_v3 = vadd.f32 %v2338_v56, %v2085_v14  ;;  %v1186_v7 = vmul.f32 %v2920_v53, %v3177_v5 }
 0x579   :  { %v3179_v8 = vadd.f32 %v2085_v14, %v1158_v30  ;;  %1210 = vadd.xlane.f32.xlu1 %v1183_v4  ;;  %v1184_v33 = vmul.f32 %v2920_v53, %v3173_v42 }
 0x57a   :  { %v1187_v12 = vmul.f32 %v2920_v53, %v3183_v3 }
 0x57b   :  { %1212 = vadd.xlane.f32.xlu0 %v1184_v33  ;;  %v1185_v11 = vmul.f32 %v2920_v53, %v3179_v8 }
 0x57d   :  { %1214 = vadd.xlane.f32.xlu1 %v1185_v11 }
 0x57f   :  { %1216 = vadd.xlane.f32.xlu0 %v1186_v7 }
 0x581   :  { %1218 = vadd.xlane.f32.xlu1 %v1187_v12 }
 0x5f0   :  { %v1189_v13 = vpop.xlane.xlu0 %1188 }
 0x5f1   :  { %v1220_v15 = vmul.f32 0.03125, %v1189_v13 }
 0x5f2   :  { %v1191_v16 = vpop.xlane.xlu1 %1190 }
 0x5f3   :  { %v3192_v50 = vsub.f32 %v3127_v28, %v1220_v15  ;;  %v1221_v17 = vmul.f32 0.03125, %v1191_v16 }
 0x5f4   :  { %v1193_v20 = vpop.xlane.xlu0 %1192 }
 0x5f5   :  { %v3195_v41 = vsub.f32 %v3131_v34, %v1221_v17  ;;  %v1222_v22 = vmul.f32 0.03125, %v1193_v20  ;;  %v1252_v23 = vmul.f32 %v2920_v53, %v3192_v50 }
 0x5f6   :  { %v1195_v24 = vpop.xlane.xlu1 %1194 }
 0x5f7   :  { %v3200_v9 = vsub.f32 %v3129_v48, %v1222_v22  ;;  %v1223_v14 = vmul.f32 0.03125, %v1195_v24  ;;  %v1268_v25 = vmul.f32 %v1252_v23, %v1252_v23  ;;  %v1253_v27 = vmul.f32 %v2920_v53, %v3195_v41  ;;  %v2455_v22 = vld [vmem:[#allocation11 + $0x8] sm:$0xff]  }
 0x5f8   :  { %v1197_v28 = vpop.xlane.xlu0 %1196  ;;  %2341 = vmatprep.subr.bf16.mxu0 %v2455_v22 }
 0x5f9   :  { %v3205_v29 = vsub.f32 %v3135_v36, %v1223_v14  ;;  %v1224_v32 = vmul.f32 0.03125, %v1197_v28  ;;  %1284 = vadd.xlane.f32.xlu0 %v1268_v25  ;;  %v1269_v34 = vmul.f32 %v1253_v27, %v1253_v27  ;;  %v1254_v35 = vmul.f32 %v2920_v53, %v3200_v9  ;;  %2342 = vmatpush3.bf16.msra.mxu0 %v2455_v22 }
 0x5fa   :  { %v1199_v19 = vpop.xlane.xlu1 %1198 }
 0x5fb   :  { %v3210_v18 = vsub.f32 %v3141_v39, %v1224_v32  ;;  %v1225_v48 = vmul.f32 0.03125, %v1199_v19  ;;  %1286 = vadd.xlane.f32.xlu1 %v1269_v34  ;;  %v1270_v37 = vmul.f32 %v1254_v35, %v1254_v35  ;;  %v1255_v38 = vmul.f32 %v2920_v53, %v3205_v29  ;;  %v2456_v34 = vld [vmem:[#allocation11 + $0x10] sm:$0xff]  }
 0x5fc   :  { %v1201_v40 = vpop.xlane.xlu0 %1200  ;;  %2343 = vmatprep.subr.bf16.mxu0 %v2456_v34 }
 0x5fd   :  { %v3215_v36 = vsub.f32 %v3147_v58, %v1225_v48  ;;  %v1226_v44 = vmul.f32 0.03125, %v1201_v40  ;;  %1288 = vadd.xlane.f32.xlu0 %v1270_v37  ;;  %v1271_v45 = vmul.f32 %v1255_v38, %v1255_v38  ;;  %v1256_v47 = vmul.f32 %v2920_v53, %v3210_v18  ;;  %2344 = vmatpush3.bf16.msra.mxu0 %v2456_v34 }
 0x5fe   :  { %v1203_v26 = vpop.xlane.xlu1 %1202 }
 0x5ff   :  { %v3220_v39 = vsub.f32 %v3145_v46, %v1226_v44  ;;  %v1227_v51 = vmul.f32 0.03125, %v1203_v26  ;;  %1290 = vadd.xlane.f32.xlu1 %v1271_v45  ;;  %v1272_v21 = vmul.f32 %v1256_v47, %v1256_v47  ;;  %v1257_v55 = vmul.f32 %v2920_v53, %v3215_v36  ;;  %v2457_v44 = vld [vmem:[#allocation11 + $0x18] sm:$0xff]   ;;  %v2458_v26 = vld [vmem:[#allocation11 + $0x20] sm:$0xff]  }
 0x600   :  { %v1205_v59 = vpop.xlane.xlu0 %1204  ;;  %2345 = vmatprep.subr.bf16.mxu0 %v2457_v44 }
 0x601   :  { %v3225_v58 = vsub.f32 %v3151_v54, %v1227_v51  ;;  %v1228_v1 = vmul.f32 0.03125, %v1205_v59  ;;  %1292 = vadd.xlane.f32.xlu0 %v1272_v21  ;;  %v1273_v60 = vmul.f32 %v1257_v55, %v1257_v55  ;;  %v1258_v63 = vmul.f32 %v2920_v53, %v3220_v39  ;;  %2346 = vmatpush3.bf16.msra.mxu0 %v2457_v44  ;;  %v2460_v51 = vld [vmem:[#allocation11 + $0x30] sm:$0xff]   ;;  %v2461_v21 = vld [vmem:[#allocation11 + $0x38] sm:$0xff]  }
 0x602   :  { %v1207_v10 = vpop.xlane.xlu1 %1206  ;;  %2347 = vmatprep.subr.bf16.mxu0 %v2458_v26 }
 0x603   :  { %v3230_v46 = vsub.f32 %v3157_v57, %v1228_v1  ;;  %v1229_v0 = vmul.f32 0.03125, %v1207_v10  ;;  %1294 = vadd.xlane.f32.xlu1 %v1273_v60  ;;  %v1274_v43 = vmul.f32 %v1258_v63, %v1258_v63  ;;  %v1259_v2 = vmul.f32 %v2920_v53, %v3225_v58 }
 0x604   :  { %v1209_v56 = vpop.xlane.xlu0 %1208 }
 0x605   :  { %v3235_v54 = vsub.f32 %v3163_v61, %v1229_v0  ;;  %v1230_v4 = vmul.f32 0.03125, %v1209_v56  ;;  %1296 = vadd.xlane.f32.xlu0 %v1274_v43  ;;  %v1275_v30 = vmul.f32 %v1259_v2, %v1259_v2  ;;  %v1260_v33 = vmul.f32 %v2920_v53, %v3230_v46  ;;  %2348 = vmatpush3.bf16.msra.mxu0 %v2458_v26 }
 0x606   :  { %v1211_v11 = vpop.xlane.xlu1 %1210 }
 0x607   :  { %v3240_v57 = vsub.f32 %v3161_v62, %v1230_v4  ;;  %v1231_v7 = vmul.f32 0.03125, %v1211_v11  ;;  %1298 = vadd.xlane.f32.xlu1 %v1275_v30  ;;  %v1276_v12 = vmul.f32 %v1260_v33, %v1260_v33  ;;  %v1261_v6 = vmul.f32 %v2920_v53, %v3235_v54 }
 0x608   :  { %v1213_v13 = vpop.xlane.xlu0 %1212 }
 0x609   :  { %v3245_v61 = vsub.f32 %v3167_v31, %v1231_v7  ;;  %v1232_v15 = vmul.f32 0.03125, %v1213_v13  ;;  %1300 = vadd.xlane.f32.xlu0 %v1276_v12  ;;  %v1277_v16 = vmul.f32 %v1261_v6, %v1261_v6  ;;  %v1262_v17 = vmul.f32 %v2920_v53, %v3240_v57 }
 0x60a   :  { %v1215_v20 = vpop.xlane.xlu1 %1214 }
 0x60b   :  { %v3250_v62 = vsub.f32 %v3173_v42, %v1232_v15  ;;  %v1233_v23 = vmul.f32 0.03125, %v1215_v20  ;;  %1302 = vadd.xlane.f32.xlu1 %v1277_v16  ;;  %v1278_v24 = vmul.f32 %v1262_v17, %v1262_v17  ;;  %v1263_v14 = vmul.f32 %v2920_v53, %v3245_v61  ;;  %v3274_v20 = vld [vmem:[%s3555_s10] ss:$0 sm:$0xff] }
 0x60c   :  { %v1217_v25 = vpop.xlane.xlu0 %1216 }
 0x60d   :  { %v3255_v31 = vsub.f32 %v3179_v8, %v1233_v23  ;;  %v1234_v27 = vmul.f32 0.03125, %v1217_v25  ;;  %1304 = vadd.xlane.f32.xlu0 %v1278_v24  ;;  %v1279_v28 = vmul.f32 %v1263_v14, %v1263_v14  ;;  %v1264_v32 = vmul.f32 %v2920_v53, %v3250_v62 }
 0x60e   :  { %v1219_v42 = vpop.xlane.xlu1 %1218 }
 0x60f   :  { %v3260_v35 = vsub.f32 %v3177_v5, %v1234_v27  ;;  %v1235_v19 = vmul.f32 0.03125, %v1219_v42  ;;  %1306 = vadd.xlane.f32.xlu1 %v1279_v28  ;;  %v1280_v48 = vmul.f32 %v1264_v32, %v1264_v32  ;;  %v1265_v37 = vmul.f32 %v2920_v53, %v3255_v31  ;;  %v3280_v32 = vld [vmem:[%s3558_s13] ss:$0 sm:$0xff] }
 0x611   :  { %v3265_v8 = vsub.f32 %v3183_v3, %v1235_v19  ;;  %1308 = vadd.xlane.f32.xlu0 %v1280_v48  ;;  %v1281_v38 = vmul.f32 %v1265_v37, %v1265_v37  ;;  %v1266_v40 = vmul.f32 %v2920_v53, %v3260_v35  ;;  %v2459_v3 = vld [vmem:[#allocation11 + $0x28] sm:$0xff]  }
 0x612   :  { %2349 = vmatprep.subr.bf16.mxu0 %v2459_v3 }
 0x613   :  { %1310 = vadd.xlane.f32.xlu1 %v1281_v38  ;;  %v1282_v5 = vmul.f32 %v1266_v40, %v1266_v40  ;;  %v1267_v45 = vmul.f32 %v2920_v53, %v3265_v8  ;;  %2350 = vmatpush3.bf16.msra.mxu0 %v2459_v3 }
 0x614   :  { %2351 = vmatprep.subr.bf16.mxu0 %v2460_v51 }
 0x615   :  { %1312 = vadd.xlane.f32.xlu0 %v1282_v5  ;;  %v1283_v47 = vmul.f32 %v1267_v45, %v1267_v45 }
 0x617   :  { %1314 = vadd.xlane.f32.xlu1 %v1283_v47  ;;  %2352 = vmatpush3.bf16.msra.mxu0 %v2460_v51 }
 0x618   :  { %2353 = vmatprep.subr.bf16.mxu0 %v2461_v21 }
 0x61b   :  { %2354 = vmatpush3.bf16.msra.mxu0 %v2461_v21 }
 0x686   :  { %v1285_v55 = vpop.xlane.xlu0 %1284 }
 0x687   :  { %v1316_v59 = vmul.f32 0.03125, %v1285_v55 }
 0x688   :  { %v1287_v53 = vpop.xlane.xlu1 %1286 }
 0x689   :  { %v1332_v1 = vadd.f32 1e-05, %v1316_v59  ;;  %v1317_v60 = vmul.f32 0.03125, %v1287_v53 }
 0x68a   :  { %v1289_v63 = vpop.xlane.xlu0 %1288 }
 0x68b   :  { %2502 = vrsqrt.f32 %v1332_v1  ;;  %v1333_v10 = vadd.f32 1e-05, %v1317_v60  ;;  %v1318_v0 = vmul.f32 0.03125, %v1289_v63 }
 0x68c   :  { %v1291_v43 = vpop.xlane.xlu1 %1290 }
 0x68d   :  { %2504 = vrsqrt.f32 %v1333_v10  ;;  %v1334_v2 = vadd.f32 1e-05, %v1318_v0  ;;  %v1319_v56 = vmul.f32 0.03125, %v1291_v43 }
 0x68e   :  { %v1293_v4 = vpop.xlane.xlu0 %1292 }
 0x68f   :  { %2506 = vrsqrt.f32 %v1334_v2  ;;  %v1335_v30 = vadd.f32 1e-05, %v1319_v56  ;;  %v1320_v33 = vmul.f32 0.03125, %v1293_v4 }
 0x690   :  { %v1295_v11 = vpop.xlane.xlu1 %1294 }
 0x691   :  { %2508 = vrsqrt.f32 %v1335_v30  ;;  %v1336_v7 = vadd.f32 1e-05, %v1320_v33  ;;  %v1321_v12 = vmul.f32 0.03125, %v1295_v11 }
 0x692   :  { %v1297_v6 = vpop.xlane.xlu0 %1296 }
 0x693   :  { %2510 = vrsqrt.f32 %v1336_v7  ;;  %v1337_v13 = vadd.f32 1e-05, %v1321_v12  ;;  %v1322_v15 = vmul.f32 0.03125, %v1297_v6 }
 0x694   :  { %v1299_v16 = vpop.xlane.xlu1 %1298 }
 0x695   :  { %v2503_v17 = vpop.eup %2502  ;;  %2512 = vrsqrt.f32 %v1337_v13  ;;  %v1338_v22 = vadd.f32 1e-05, %v1322_v15  ;;  %v1323_v23 = vmul.f32 0.03125, %v1299_v16 }
 0x696   :  { %v1301_v24 = vpop.xlane.xlu0 %1300  ;;  %v1364_v14 = vmul.f32 %v2503_v17, %v3192_v50 }
 0x697   :  { %v2505_v25 = vpop.eup %2504  ;;  %2514 = vrsqrt.f32 %v1338_v22  ;;  %v1339_v27 = vadd.f32 1e-05, %v1323_v23  ;;  %v1324_v28 = vmul.f32 0.03125, %v1301_v24 }
 0x698   :  { %v1303_v42 = vpop.xlane.xlu1 %1302  ;;  %v1365_v34 = vmul.f32 %v2505_v25, %v3195_v41  ;;  %v1386_v19 = vmul.f32 %v3274_v20, %v1364_v14 }
 0x699   :  { %v2507_v48 = vpop.eup %2506  ;;  %2516 = vrsqrt.f32 %v1339_v27  ;;  %v1340_v37 = vadd.f32 1e-05, %v1324_v28  ;;  %v1325_v38 = vmul.f32 0.03125, %v1303_v42 }
 0x69a   :  { %v1366_v50 = vmul.f32 %v2507_v48, %v3200_v9  ;;  %v1305_v40 = vpop.xlane.xlu0 %1304  ;;  %v1387_v44 = vmul.f32 %v3274_v20, %v1365_v34  ;;  %v1408_v5 = vadd.f32 %v3280_v32, %v1386_v19 }
 0x69b   :  { %v2509_v45 = vpop.eup %2508  ;;  %2518 = vrsqrt.f32 %v1340_v37  ;;  %v1341_v47 = vadd.f32 1e-05, %v1325_v38  ;;  %v1326_v26 = vmul.f32 0.03125, %v1305_v40 }
 0x69c   :  { %v1388_v3 = vmul.f32 %v3274_v20, %v1366_v50  ;;  %v1367_v41 = vmul.f32 %v2509_v45, %v3205_v29  ;;  %v1307_v51 = vpop.xlane.xlu1 %1306  ;;  %v1409_v21 = vadd.f32 %v3280_v32, %v1387_v44  ;;  %v1424_v53 = vmax.f32 %v1408_v5, 0.0 }
 0x69d   :  { %v2511_v55 = vpop.eup %2510  ;;  %2520 = vrsqrt.f32 %v1341_v47  ;;  %v1342_v59 = vadd.f32 1e-05, %v1326_v26  ;;  %v1327_v9 = vmul.f32 0.03125, %v1307_v51 }
 0x69e   :  { %v1389_v1 = vmul.f32 %v3274_v20, %v1367_v41  ;;  %v1309_v60 = vpop.xlane.xlu0 %1308  ;;  %v1425_v63 = vmax.f32 %v1409_v21, 0.0  ;;  %v1410_v10 = vadd.f32 %v3280_v32, %v1388_v3  ;;  %v1368_v0 = vmul.f32 %v2511_v55, %v3210_v18 }
 0x69f   :  { %v2513_v43 = vpop.eup %2512  ;;  %2522 = vrsqrt.f32 %v1342_v59  ;;  %v1343_v2 = vadd.f32 1e-05, %v1327_v9  ;;  %v1328_v29 = vmul.f32 0.03125, %v1309_v60 }
 0x6a0   :  { %v1311_v56 = vpop.xlane.xlu1 %1310  ;;  %v1440_v4 = vpack.c.bf16 %v1425_v63, %v1424_v53  ;;  %v1411_v30 = vadd.f32 %v3280_v32, %v1389_v1  ;;  %v1369_v33 = vmul.f32 %v2513_v43, %v3215_v36  ;;  %v1390_v6 = vmul.f32 %v3274_v20, %v1368_v0 }
 0x6a1   :  { %v2515_v11 = vpop.eup %2514  ;;  %2524 = vrsqrt.f32 %v1343_v2  ;;  %v1344_v7 = vadd.f32 1e-05, %v1328_v29  ;;  %v1329_v12 = vmul.f32 0.03125, %v1311_v56  ;;  %v1426_v15 = vmax.f32 %v1410_v10, 0.0 }
 0x6a2   :  { %2355 = vmatprep.mubr.bf16.mxu0 %v1440_v4  ;;  %v1313_v13 = vpop.xlane.xlu0 %1312  ;;  %v1427_v18 = vmax.f32 %v1411_v30, 0.0  ;;  %v1391_v16 = vmul.f32 %v3274_v20, %v1369_v33  ;;  %v1370_v17 = vmul.f32 %v2515_v11, %v3220_v39  ;;  %v1412_v36 = vadd.f32 %v3280_v32, %v1390_v6 }
 0x6a3   :  { %v2517_v22 = vpop.eup %2516  ;;  %2526 = vrsqrt.f32 %v1344_v7  ;;  %v1345_v23 = vadd.f32 1e-05, %v1329_v12  ;;  %v1330_v24 = vmul.f32 0.03125, %v1313_v13 }
 0x6a4   :  { %v1315_v14 = vpop.xlane.xlu1 %1314  ;;  %v1441_v25 = vpack.c.bf16 %v1427_v18, %v1426_v15  ;;  %v1413_v27 = vadd.f32 %v3280_v32, %v1391_v16  ;;  %v1371_v28 = vmul.f32 %v2517_v22, %v3225_v58  ;;  %v1392_v42 = vmul.f32 %v3274_v20, %v1370_v17 }
 0x6a5   :  { %v2519_v34 = vpop.eup %2518  ;;  %2528 = vrsqrt.f32 %v1345_v23  ;;  %v1346_v19 = vadd.f32 1e-05, %v1330_v24  ;;  %v1331_v48 = vmul.f32 0.03125, %v1315_v14  ;;  %v1428_v37 = vmax.f32 %v1412_v36, 0.0 }
 0x6a6   :  { %2356 = vmatmul.mubr.bf16.vlgmr.msra.gmra.mrb[32].mxu0 %v1441_v25  ;;  %v1429_v39 = vmax.f32 %v1413_v27, 0.0  ;;  %v1393_v38 = vmul.f32 %v3274_v20, %v1371_v28  ;;  %v1414_v50 = vadd.f32 %v3280_v32, %v1392_v42  ;;  %v1372_v40 = vmul.f32 %v2519_v34, %v3230_v46  ;;  %v2462_v27 = vld [vmem:[#allocation3] sm:$0xff]  }
 0x6a7   :  { %v2521_v44 = vpop.eup %2520  ;;  %2530 = vrsqrt.f32 %v1346_v19  ;;  %v1347_v5 = vadd.f32 1e-05, %v1331_v48  ;;  %2387 = vmatprep.mubr.bf16.mxu1 %v2462_v27 }
 0x6a8   :  { %v1442_v45 = vpack.c.bf16 %v1429_v39, %v1428_v37  ;;  %v1415_v58 = vadd.f32 %v3280_v32, %v1393_v38  ;;  %v1373_v47 = vmul.f32 %v2521_v44, %v3235_v54  ;;  %v1394_v3 = vmul.f32 %v3274_v20, %v1372_v40 }
 0x6a9   :  { %v2523_v26 = vpop.eup %2522  ;;  %2532 = vrsqrt.f32 %v1347_v5  ;;  %v1430_v41 = vmax.f32 %v1414_v50, 0.0 }
 0x6aa   :  { %2359 = vmatprep.mubr.bf16.mxu0 %v1442_v45  ;;  %v1431_v51 = vmax.f32 %v1415_v58, 0.0  ;;  %v1395_v21 = vmul.f32 %v3274_v20, %v1373_v47  ;;  %v1374_v55 = vmul.f32 %v2523_v26, %v3240_v57  ;;  %v1416_v59 = vadd.f32 %v3280_v32, %v1394_v3 }
 0x6ab   :  { %v2525_v46 = vpop.eup %2524 }
 0x6ac   :  { %v1443_v9 = vpack.c.bf16 %v1431_v51, %v1430_v41  ;;  %v1417_v53 = vadd.f32 %v3280_v32, %v1395_v21  ;;  %v1375_v1 = vmul.f32 %v2525_v46, %v3245_v61  ;;  %v1396_v54 = vmul.f32 %v3274_v20, %v1374_v55  ;;  %v2463_v46 = vld [vmem:[#allocation3 + $0x8] sm:$0xff]  }
 0x6ad   :  { %v2527_v60 = vpop.eup %2526  ;;  %v1432_v63 = vmax.f32 %v1416_v59, 0.0  ;;  %v2464_v59 = vld [vmem:[#allocation3 + $0x10] sm:$0xff]  }
 0x6ae   :  { %2360 = vmatmul.mubr.bf16.gmra.mrb[36].mxu0 %v1443_v9  ;;  %v1433_v10 = vmax.f32 %v1417_v53, 0.0  ;;  %v1397_v0 = vmul.f32 %v3274_v20, %v1375_v1  ;;  %v1418_v43 = vadd.f32 %v3280_v32, %v1396_v54  ;;  %v1376_v57 = vmul.f32 %v2527_v60, %v3250_v62  ;;  %v2465_v9 = vld [vmem:[#allocation3 + $0x18] sm:$0xff]   ;;  %v2466_v53 = vld [vmem:[#allocation3 + $0x20] sm:$0xff]   ;;  %v2467_v1 = vld [vmem:[#allocation3 + $0x28] sm:$0xff]  }
 0x6af   :  { %v2529_v2 = vpop.eup %2528  ;;  %v2468_v54 = vld [vmem:[#allocation3 + $0x30] sm:$0xff]   ;;  %v2469_v60 = vld [vmem:[#allocation3 + $0x38] sm:$0xff]  }
 0x6b0   :  { %v1444_v29 = vpack.c.bf16 %v1433_v10, %v1432_v63  ;;  %v1419_v56 = vadd.f32 %v3280_v32, %v1397_v0  ;;  %v1377_v4 = vmul.f32 %v2529_v2, %v3255_v31  ;;  %v1398_v61 = vmul.f32 %v3274_v20, %v1376_v57  ;;  %v3337_v0 = vld [vmem:[%s3552_s7] ss:$0 sm:$0xff]  ;;  %s2746_s7 = smov [#allocation12]  }
 0x6b1   :  { %v2531_v30 = vpop.eup %2530  ;;  %v1434_v33 = vmax.f32 %v1418_v43, 0.0  ;;  %v3331_v63 = vsel %vm1801_vm1, 1.0, %v2745_v52  ;;  %s2035_s26 = sshll.u32 %s2746_s7, 4  ;;  %s2036_s26 = int_to_ptr.vmem [resolvable:$true] %s2035_s26 }
 0x6b2   :  { %2363 = vmatprep.mubr.bf16.mxu0 %v1444_v29  ;;  %v1435_v11 = vmax.f32 %v1419_v56, 0.0  ;;  %v1399_v7 = vmul.f32 %v3274_v20, %v1377_v4  ;;  %v1378_v12 = vmul.f32 %v2531_v30, %v3260_v35  ;;  %v1420_v13 = vadd.f32 %v3280_v32, %v1398_v61  ;;  %s2708_s0 = scalar_lea.vmem %s2036_s26, 2048  ;;  %p2713_p13 = scmp.lt.s32.totalorder %s2036_s26, %s2036_s26 }
 0x6b3   :  { %v2533_v6 = vpop.eup %2532  ;;  %v2114_v10 = vadd.f32 -1.0, %v3331_v63  ;;  %p2709_p12 = scmp.ne.s32.totalorder %s2036_s26, %s2708_s0  ;;  %p2714_p0 = scmp.lt.s32.totalorder %s2708_s0, %s2708_s0 }
 0x6b4   :  { %v1445_v62 = vpack.c.bf16 %v1435_v11, %v1434_v33  ;;  %v1421_v15 = vadd.f32 %v3280_v32, %v1399_v7  ;;  %v1379_v18 = vmul.f32 %v2533_v6, %v3265_v8  ;;  %v1400_v31 = vmul.f32 %v3274_v20, %v1378_v12 }
 0x6b5   :  { %v1436_v16 = vmax.f32 %v1420_v13, 0.0  ;;  %v3342_v29 = vmul.f32 1e+30, %v2114_v10  ;;  %p2715_p1 = por %p2714_p0, %p2713_p13 }
 0x6b6   :  { %2364 = vmatmul.mubr.bf16.gmra.mrb[40].mxu0 %v1445_v62  ;;  %v1437_v17 = vmax.f32 %v1421_v15, 0.0  ;;  %v1401_v22 = vmul.f32 %v3274_v20, %v1379_v18  ;;  %v1422_v23 = vadd.f32 %v3280_v32, %v1400_v31 }
 0x6b7   :  { %p2716_p2 = pnand %p2715_p1, %p2709_p12 }
 0x6b8   :  { %v1446_v24 = vpack.c.bf16 %v1437_v17, %v1436_v16  ;;  %v1423_v35 = vadd.f32 %v3280_v32, %v1401_v22  ;;  %v1438_v36 = vmax.f32 %v1422_v23, 0.0 }
 0x6ba   :  { %2367 = vmatprep.mubr.bf16.mxu0 %v1446_v24  ;;  %v1439_v14 = vmax.f32 %v1423_v35, 0.0 }
 0x6bc   :  { %v1447_v25 = vpack.c.bf16 %v1439_v14, %v1438_v36 }
 0x6be   :  { %2368 = vmatmul.mubr.bf16.gmra.mrb[44].mxu0 %v1447_v25 }
 0x779   :  { %v2357_v8 = vpop.f32.mrb[32].mxu0 }
 0x77a   :  { %v1562_v28 = vpop.f32.mrb[33].mxu0 }
 0x77b   :  { %v2358_v42 = vpop.f32.mrb[34].mxu0 }
 0x77c   :  { %v1626_v34 = vpack.c.bf16 %v2358_v42, %v2357_v8  ;;  %v1565_v19 = vpop.f32.mrb[35].mxu0 }
 0x77d   :  { %v1625_v48 = vpack.c.bf16 %v1565_v19, %v1562_v28 }
 0x77f   :  { %2371 = vmatprep.subr.bf16.mxu1 %v1625_v48 }
 0x780   :  { %2372 = vmatpush3.bf16.msra.mxu1 %v1625_v48 }
 0x781   :  { %v2361_v20 = vpop.f32.mrb[36].mxu0  ;;  %2373 = vmatprep.subr.bf16.mxu1 %v1626_v34 }
 0x782   :  { %v1578_v37 = vpop.f32.mrb[37].mxu0 }
 0x783   :  { %v2362_v39 = vpop.f32.mrb[38].mxu0 }
 0x784   :  { %v1628_v32 = vpack.c.bf16 %v2362_v39, %v2361_v20  ;;  %v1581_v38 = vpop.f32.mrb[39].mxu0  ;;  %2374 = vmatpush3.bf16.msra.mxu1 %v1626_v34 }
 0x785   :  { %v1627_v50 = vpack.c.bf16 %v1581_v38, %v1578_v37 }
 0x787   :  { %2375 = vmatprep.subr.bf16.mxu1 %v1627_v50 }
 0x788   :  { %2376 = vmatpush3.bf16.msra.mxu1 %v1627_v50 }
 0x789   :  { %v2365_v40 = vpop.f32.mrb[40].mxu0  ;;  %2377 = vmatprep.subr.bf16.mxu1 %v1628_v32 }
 0x78a   :  { %v1594_v44 = vpop.f32.mrb[41].mxu0 }
 0x78b   :  { %v2366_v5 = vpop.f32.mrb[42].mxu0 }
 0x78c   :  { %v1630_v45 = vpack.c.bf16 %v2366_v5, %v2365_v40  ;;  %v1597_v58 = vpop.f32.mrb[43].mxu0  ;;  %2378 = vmatpush3.bf16.msra.mxu1 %v1628_v32 }
 0x78d   :  { %v1629_v47 = vpack.c.bf16 %v1597_v58, %v1594_v44 }
 0x78f   :  { %2379 = vmatprep.subr.bf16.mxu1 %v1629_v47 }
 0x790   :  { %2380 = vmatpush3.bf16.msra.mxu1 %v1629_v47 }
 0x791   :  { %v2369_v26 = vpop.f32.mrb[44].mxu0  ;;  %2381 = vmatprep.subr.bf16.mxu1 %v1630_v45 }
 0x792   :  { %v1610_v3 = vpop.f32.mrb[45].mxu0 }
 0x793   :  { %v2370_v41 = vpop.f32.mrb[46].mxu0 }
 0x794   :  { %v1632_v51 = vpack.c.bf16 %v2370_v41, %v2369_v26  ;;  %v1613_v21 = vpop.f32.mrb[47].mxu0  ;;  %2382 = vmatpush3.bf16.msra.mxu1 %v1630_v45 }
 0x795   :  { %v1631_v55 = vpack.c.bf16 %v1613_v21, %v1610_v3 }
 0x797   :  { %2383 = vmatprep.subr.bf16.mxu1 %v1631_v55 }
 0x798   :  { %2384 = vmatpush3.bf16.msra.mxu1 %v1631_v55 }
 0x799   :  { %2385 = vmatprep.subr.bf16.mxu1 %v1632_v51 }
 0x79c   :  { %2386 = vmatpush3.bf16.msra.mxu1 %v1632_v51 }
 0x79f   :  { %2388 = vmatmul.mubr.bf16.vlgmr.msra.gmra.mrb[32].mxu1 %v2463_v46 }
 0x7a0   :  { %2391 = vmatprep.mubr.bf16.mxu1 %v2464_v59 }
 0x7a7   :  { %2392 = vmatmul.mubr.bf16.gmra.mrb[36].mxu1 %v2465_v9 }
 0x7a8   :  { %2395 = vmatprep.mubr.bf16.mxu1 %v2466_v53 }
 0x7af   :  { %2396 = vmatmul.mubr.bf16.gmra.mrb[40].mxu1 %v2467_v1 }
 0x7b0   :  { %2399 = vmatprep.mubr.bf16.mxu1 %v2468_v54 }
 0x7b7   :  { %2400 = vmatmul.mubr.bf16.gmra.mrb[44].mxu1 %v2469_v60 }
 0x872   :  { %v2389_v43 = vpop.f32.mrb[32].mxu1 }
 0x873   :  { %v3340_v57 = vadd.f32 %v2389_v43, %v3337_v0  ;;  %v1738_v2 = vpop.f32.mrb[33].mxu1 }
 0x874   :  { %v3345_v56 = vadd.f32 %v3337_v0, %v1738_v2  ;;  %v2390_v49 = vpop.f32.mrb[34].mxu1 }
 0x875   :  { %v1806_v52 = vmul.f32 %v3331_v63, %v3340_v57  ;;  %v3350_v4 = vadd.f32 %v2390_v49, %v3337_v0  ;;  %v1741_v30 = vpop.f32.mrb[35].mxu1 }
 0x876   :  { %v3353_v61 = vadd.f32 %v3337_v0, %v1741_v30  ;;  %v1804_v33 = vmul.f32 %v3331_v63, %v3345_v56 }
 0x877   :  { %v1807_v11 = vmul.f32 %v3331_v63, %v3350_v4  ;;  %v1824_v7 = vadd.f32 %v3342_v29, %v1806_v52 }
 0x878   :  { %v1805_v12 = vmul.f32 %v3331_v63, %v3353_v61  ;;  %v1822_v18 = vadd.f32 %v3342_v29, %v1804_v33 }
 0x879   :  { %1842 = vmax.xlane.f32.xlu0 %v1824_v7  ;;  %v1825_v6 = vadd.f32 %v3342_v29, %v1807_v11 }
 0x87a   :  { %v2393_v13 = vpop.f32.mrb[36].mxu1  ;;  %v1823_v24 = vadd.f32 %v3342_v29, %v1805_v12 }
 0x87b   :  { %v3364_v62 = vadd.f32 %v2393_v13, %v3337_v0  ;;  %1844 = vmax.xlane.f32.xlu1 %v1825_v6  ;;  %v1754_v15 = vpop.f32.mrb[37].mxu1 }
 0x87c   :  { %v3368_v31 = vadd.f32 %v3337_v0, %v1754_v15  ;;  %v2394_v16 = vpop.f32.mrb[38].mxu1 }
 0x87d   :  { %v1810_v17 = vmul.f32 %v3331_v63, %v3364_v62  ;;  %v3373_v22 = vadd.f32 %v2394_v16, %v3337_v0  ;;  %v1757_v23 = vpop.f32.mrb[39].mxu1  ;;  %1838 = vmax.xlane.f32.xlu0 %v1822_v18 }
 0x87e   :  { %v3377_v35 = vadd.f32 %v3337_v0, %v1757_v23  ;;  %v1808_v36 = vmul.f32 %v3331_v63, %v3368_v31 }
 0x87f   :  { %v1811_v14 = vmul.f32 %v3331_v63, %v3373_v22  ;;  %1840 = vmax.xlane.f32.xlu1 %v1823_v24  ;;  %v1828_v25 = vadd.f32 %v3342_v29, %v1810_v17 }
 0x880   :  { %v1809_v27 = vmul.f32 %v3331_v63, %v3377_v35  ;;  %v1826_v19 = vadd.f32 %v3342_v29, %v1808_v36 }
 0x881   :  { %1850 = vmax.xlane.f32.xlu0 %v1828_v25  ;;  %v1829_v8 = vadd.f32 %v3342_v29, %v1811_v14 }
 0x882   :  { %v2397_v28 = vpop.f32.mrb[40].mxu1  ;;  %v1827_v38 = vadd.f32 %v3342_v29, %v1809_v27 }
 0x883   :  { %v3388_v42 = vadd.f32 %v2397_v28, %v3337_v0  ;;  %v1770_v34 = vpop.f32.mrb[41].mxu1  ;;  %1852 = vmax.xlane.f32.xlu1 %v1829_v8 }
 0x884   :  { %v3392_v48 = vadd.f32 %v3337_v0, %v1770_v34  ;;  %v2398_v20 = vpop.f32.mrb[42].mxu1 }
 0x885   :  { %v1814_v37 = vmul.f32 %v3331_v63, %v3388_v42  ;;  %v3397_v39 = vadd.f32 %v2398_v20, %v3337_v0  ;;  %v1773_v32 = vpop.f32.mrb[43].mxu1  ;;  %1846 = vmax.xlane.f32.xlu0 %v1826_v19 }
 0x886   :  { %v3401_v50 = vadd.f32 %v3337_v0, %v1773_v32  ;;  %v1812_v40 = vmul.f32 %v3331_v63, %v3392_v48 }
 0x887   :  { %v1815_v44 = vmul.f32 %v3331_v63, %v3397_v39  ;;  %1848 = vmax.xlane.f32.xlu1 %v1827_v38  ;;  %v1832_v5 = vadd.f32 %v3342_v29, %v1814_v37 }
 0x888   :  { %v1813_v45 = vmul.f32 %v3331_v63, %v3401_v50  ;;  %v1830_v3 = vadd.f32 %v3342_v29, %v1812_v40 }
 0x889   :  { %1858 = vmax.xlane.f32.xlu0 %v1832_v5  ;;  %v1833_v58 = vadd.f32 %v3342_v29, %v1815_v44 }
 0x88a   :  { %v2401_v47 = vpop.f32.mrb[44].mxu1  ;;  %v1831_v46 = vadd.f32 %v3342_v29, %v1813_v45 }
 0x88b   :  { %v1786_v26 = vpop.f32.mrb[45].mxu1  ;;  %1860 = vmax.xlane.f32.xlu1 %v1833_v58  ;;  %v3413_v41 = vadd.f32 %v2401_v47, %v3337_v0 }
 0x88c   :  { %v3416_v51 = vadd.f32 %v3337_v0, %v1786_v26  ;;  %v2402_v21 = vpop.f32.mrb[46].mxu1 }
 0x88d   :  { %v1789_v55 = vpop.f32.mrb[47].mxu1  ;;  %1854 = vmax.xlane.f32.xlu0 %v1830_v3  ;;  %v3422_v9 = vadd.f32 %v2402_v21, %v3337_v0  ;;  %v1818_v1 = vmul.f32 %v3331_v63, %v3413_v41 }
 0x88e   :  { %v1816_v59 = vmul.f32 %v3331_v63, %v3416_v51  ;;  %v3425_v53 = vadd.f32 %v3337_v0, %v1789_v55 }
 0x88f   :  { %1856 = vmax.xlane.f32.xlu1 %v1831_v46  ;;  %v1819_v10 = vmul.f32 %v3331_v63, %v3422_v9  ;;  %v1836_v2 = vadd.f32 %v3342_v29, %v1818_v1 }
 0x890   :  { %v1817_v54 = vmul.f32 %v3331_v63, %v3425_v53  ;;  %v1834_v60 = vadd.f32 %v3342_v29, %v1816_v59 }
 0x891   :  { %v1837_v0 = vadd.f32 %v3342_v29, %v1819_v10 }
 0x892   :  { %1862 = vmax.xlane.f32.xlu0 %v1834_v60  ;;  %v1835_v43 = vadd.f32 %v3342_v29, %v1817_v54 }
 0x894   :  { %1864 = vmax.xlane.f32.xlu1 %v1835_v43 }
 0x896   :  { %1866 = vmax.xlane.f32.xlu0 %v1836_v2 }
 0x898   :  { %1868 = vmax.xlane.f32.xlu1 %v1837_v0 }
 0x906   :  { %v1843_v49 = vpop.xlane.xlu0 %1842 }
 0x907   :  { %v3438_v52 = vsub.f32 %v3340_v57, %v1843_v49 }
 0x908   :  { %v1845_v30 = vpop.xlane.xlu1 %1844 }
 0x909   :  { %v1890_v33 = vmul.f32 1.442695, %v3438_v52  ;;  %v3442_v11 = vsub.f32 %v3350_v4, %v1845_v30 }
 0x90a   :  { %v1839_v7 = vpop.xlane.xlu0 %1838 }
 0x90b   :  { %2534 = vpow2.f32 %v1890_v33  ;;  %v1892_v12 = vmul.f32 1.442695, %v3442_v11  ;;  %v3446_v6 = vsub.f32 %v3345_v56, %v1839_v7 }
 0x90c   :  { %v1841_v13 = vpop.xlane.xlu1 %1840 }
 0x90d   :  { %2536 = vpow2.f32 %v1892_v12  ;;  %v1886_v29 = vmul.f32 1.442695, %v3446_v6  ;;  %v3450_v57 = vsub.f32 %v3353_v61, %v1841_v13 }
 0x90e   :  { %v1851_v15 = vpop.xlane.xlu0 %1850 }
 0x90f   :  { %2538 = vpow2.f32 %v1886_v29  ;;  %v1888_v18 = vmul.f32 1.442695, %v3450_v57  ;;  %v3454_v4 = vsub.f32 %v3364_v62, %v1851_v15 }
 0x910   :  { %v1853_v16 = vpop.xlane.xlu1 %1852 }
 0x911   :  { %2540 = vpow2.f32 %v1888_v18  ;;  %v1898_v17 = vmul.f32 1.442695, %v3454_v4  ;;  %v3458_v56 = vsub.f32 %v3373_v22, %v1853_v16 }
 0x912   :  { %v1847_v23 = vpop.xlane.xlu0 %1846 }
 0x913   :  { %2542 = vpow2.f32 %v1898_v17  ;;  %v1900_v24 = vmul.f32 1.442695, %v3458_v56  ;;  %v3462_v61 = vsub.f32 %v3368_v31, %v1847_v23 }
 0x914   :  { %v1849_v36 = vpop.xlane.xlu1 %1848 }
 0x915   :  { %v2535_v14 = vpop.eup %2534  ;;  %2544 = vpow2.f32 %v1900_v24  ;;  %v1894_v62 = vmul.f32 1.442695, %v3462_v61  ;;  %v3466_v25 = vsub.f32 %v3377_v35, %v1849_v36 }
 0x916   :  { %v1859_v27 = vpop.xlane.xlu0 %1858  ;;  %v1920_v8 = vmul.f32 %v2535_v14, %v3331_v63 }
 0x917   :  { %v2537_v22 = vpop.eup %2536  ;;  %2546 = vpow2.f32 %v1894_v62  ;;  %v1896_v28 = vmul.f32 1.442695, %v3466_v25  ;;  %v3471_v34 = vsub.f32 %v3388_v42, %v1859_v27 }
 0x918   :  { %v1861_v31 = vpop.xlane.xlu1 %1860  ;;  %1938 = vadd.xlane.f32.xlu0 %v1920_v8  ;;  %v1921_v19 = vmul.f32 %v2537_v22, %v3331_v63 }
 0x919   :  { %v2539_v20 = vpop.eup %2538  ;;  %2548 = vpow2.f32 %v1896_v28  ;;  %v1906_v37 = vmul.f32 1.442695, %v3471_v34  ;;  %v3476_v35 = vsub.f32 %v3397_v39, %v1861_v31 }
 0x91a   :  { %1940 = vadd.xlane.f32.xlu1 %v1921_v19  ;;  %v1855_v32 = vpop.xlane.xlu0 %1854  ;;  %v1918_v38 = vmul.f32 %v2539_v20, %v3331_v63 }
 0x91b   :  { %v2541_v40 = vpop.eup %2540  ;;  %2550 = vpow2.f32 %v1906_v37  ;;  %v1908_v42 = vmul.f32 1.442695, %v3476_v35  ;;  %v3481_v44 = vsub.f32 %v3392_v48, %v1855_v32 }
 0x91c   :  { %v1857_v5 = vpop.xlane.xlu1 %1856  ;;  %1934 = vadd.xlane.f32.xlu0 %v1918_v38  ;;  %v1919_v45 = vmul.f32 %v2541_v40, %v3331_v63 }
 0x91d   :  { %v2543_v58 = vpop.eup %2542  ;;  %2552 = vpow2.f32 %v1908_v42  ;;  %v1902_v39 = vmul.f32 1.442695, %v3481_v44  ;;  %v3486_v47 = vsub.f32 %v3401_v50, %v1857_v5 }
 0x91e   :  { %1936 = vadd.xlane.f32.xlu1 %v1919_v45  ;;  %v1924_v26 = vmul.f32 %v2543_v58, %v3331_v63 }
 0x91f   :  { %v2545_v3 = vpop.eup %2544  ;;  %2554 = vpow2.f32 %v1902_v39  ;;  %v1904_v21 = vmul.f32 1.442695, %v3486_v47  ;;  %v1863_v48 = vpop.xlane.xlu0 %1862 }
 0x920   :  { %v3491_v55 = vsub.f32 %v3416_v51, %v1863_v48  ;;  %1946 = vadd.xlane.f32.xlu0 %v1924_v26  ;;  %v1925_v46 = vmul.f32 %v2545_v3, %v3331_v63 }
 0x921   :  { %v2547_v59 = vpop.eup %2546  ;;  %2556 = vpow2.f32 %v1904_v21  ;;  %v1865_v1 = vpop.xlane.xlu1 %1864 }
 0x922   :  { %v1910_v50 = vmul.f32 1.442695, %v3491_v55  ;;  %v3496_v54 = vsub.f32 %v3425_v53, %v1865_v1  ;;  %1948 = vadd.xlane.f32.xlu1 %v1925_v46  ;;  %v1922_v60 = vmul.f32 %v2547_v59, %v3331_v63 }
 0x923   :  { %v2549_v10 = vpop.eup %2548  ;;  %v1867_v43 = vpop.xlane.xlu0 %1866 }
 0x924   :  { %2558 = vpow2.f32 %v1910_v50  ;;  %v1912_v51 = vmul.f32 1.442695, %v3496_v54  ;;  %v3501_v2 = vsub.f32 %v3413_v41, %v1867_v43  ;;  %1942 = vadd.xlane.f32.xlu0 %v1922_v60  ;;  %v1923_v0 = vmul.f32 %v2549_v10, %v3331_v63 }
 0x925   :  { %v2551_v49 = vpop.eup %2550  ;;  %v1869_v30 = vpop.xlane.xlu1 %1868 }
 0x926   :  { %2560 = vpow2.f32 %v1912_v51  ;;  %v1914_v53 = vmul.f32 1.442695, %v3501_v2  ;;  %v3506_v33 = vsub.f32 %v3422_v9, %v1869_v30  ;;  %1944 = vadd.xlane.f32.xlu1 %v1923_v0  ;;  %v1928_v7 = vmul.f32 %v2551_v49, %v3331_v63 }
 0x927   :  { %v2553_v12 = vpop.eup %2552 }
 0x928   :  { %2562 = vpow2.f32 %v1914_v53  ;;  %v1916_v13 = vmul.f32 1.442695, %v3506_v33  ;;  %1954 = vadd.xlane.f32.xlu0 %v1928_v7  ;;  %v1929_v41 = vmul.f32 %v2553_v12, %v3331_v63 }
 0x929   :  { %v2555_v29 = vpop.eup %2554 }
 0x92a   :  { %2564 = vpow2.f32 %v1916_v13  ;;  %1956 = vadd.xlane.f32.xlu1 %v1929_v41  ;;  %v1926_v15 = vmul.f32 %v2555_v29, %v3331_v63 }
 0x92b   :  { %v2557_v18 = vpop.eup %2556 }
 0x92c   :  { %1950 = vadd.xlane.f32.xlu0 %v1926_v15  ;;  %v1927_v9 = vmul.f32 %v2557_v18, %v3331_v63 }
 0x92e   :  { %v2559_v16 = vpop.eup %2558  ;;  %1952 = vadd.xlane.f32.xlu1 %v1927_v9 }
 0x92f   :  { %v1930_v17 = vmul.f32 %v2559_v16, %v3331_v63 }
 0x930   :  { %v2561_v23 = vpop.eup %2560 }
 0x931   :  { %1958 = vadd.xlane.f32.xlu0 %v1930_v17  ;;  %v1931_v24 = vmul.f32 %v2561_v23, %v3331_v63 }
 0x932   :  { %v2563_v36 = vpop.eup %2562 }
 0x933   :  { %1960 = vadd.xlane.f32.xlu1 %v1931_v24  ;;  %v1932_v14 = vmul.f32 %v2563_v36, %v3331_v63 }
 0x934   :  { %v2565_v62 = vpop.eup %2564 }
 0x935   :  { %1962 = vadd.xlane.f32.xlu0 %v1932_v14  ;;  %v1933_v27 = vmul.f32 %v2565_v62, %v3331_v63 }
 0x937   :  { %1964 = vadd.xlane.f32.xlu1 %v1933_v27 }
 0x9a5   :  { %v1939_v8 = vpop.xlane.xlu0 %1938 }
 0x9a6   :  { %2566 = vlog2.f32 %v1939_v8 }
 0x9a7   :  { %v1941_v22 = vpop.xlane.xlu1 %1940 }
 0x9a8   :  { %2568 = vlog2.f32 %v1941_v22 }
 0x9a9   :  { %v1935_v28 = vpop.xlane.xlu0 %1934 }
 0x9aa   :  { %2570 = vlog2.f32 %v1935_v28 }
 0x9ab   :  { %v1937_v31 = vpop.xlane.xlu1 %1936 }
 0x9ac   :  { %2572 = vlog2.f32 %v1937_v31 }
 0x9ad   :  { %v1947_v19 = vpop.xlane.xlu0 %1946 }
 0x9ae   :  { %2574 = vlog2.f32 %v1947_v19 }
 0x9af   :  { %v1949_v20 = vpop.xlane.xlu1 %1948 }
 0x9b0   :  { %v2567_v37 = vpop.eup %2566  ;;  %2576 = vlog2.f32 %v1949_v20 }
 0x9b1   :  { %v1971_v32 = vmul.f32 0.6931472, %v2567_v37  ;;  %v1943_v38 = vpop.xlane.xlu0 %1942 }
 0x9b2   :  { %v2569_v40 = vpop.eup %2568  ;;  %2578 = vlog2.f32 %v1943_v38 }
 0x9b3   :  { %v2000_v63 = vsub.f32 %v3438_v52, %v1971_v32  ;;  %v1973_v42 = vmul.f32 0.6931472, %v2569_v40  ;;  %v1945_v5 = vpop.xlane.xlu1 %1944 }
 0x9b4   :  { %v2571_v45 = vpop.eup %2570  ;;  %2580 = vlog2.f32 %v1945_v5 }
 0x9b5   :  { %2016 = vst [vmem:[#allocation12 + $0x10] sm:$0xff] %v2000_v63  ;;  %v2001_v58 = vsub.f32 %v3442_v11, %v1973_v42  ;;  %v1967_v39 = vmul.f32 0.6931472, %v2571_v45  ;;  %v1955_v26 = vpop.xlane.xlu0 %1954 }
 0x9b6   :  { %v2573_v3 = vpop.eup %2572  ;;  %2582 = vlog2.f32 %v1955_v26 }
 0x9b7   :  { %2017 = vst [vmem:[#allocation12 + $0x18] sm:$0xff] %v2001_v58  ;;  %v1998_v21 = vsub.f32 %v3446_v6, %v1967_v39  ;;  %v1969_v48 = vmul.f32 0.6931472, %v2573_v3  ;;  %v1957_v46 = vpop.xlane.xlu1 %1956 }
 0x9b8   :  { %v2575_v59 = vpop.eup %2574  ;;  %2584 = vlog2.f32 %v1957_v46 }
 0x9b9   :  { %2014 = vst [vmem:[#allocation12] sm:$0xff] %v1998_v21  ;;  %v1999_v52 = vsub.f32 %v3450_v57, %v1969_v48  ;;  %v1979_v1 = vmul.f32 0.6931472, %v2575_v59  ;;  %v1951_v50 = vpop.xlane.xlu0 %1950 }
 0x9ba   :  { %v2577_v60 = vpop.eup %2576  ;;  %2586 = vlog2.f32 %v1951_v50 }
 0x9bb   :  { %2015 = vst [vmem:[#allocation12 + $0x8] sm:$0xff] %v1999_v52  ;;  %v2004_v11 = vsub.f32 %v3454_v4, %v1979_v1  ;;  %v1981_v10 = vmul.f32 0.6931472, %v2577_v60  ;;  %v1953_v43 = vpop.xlane.xlu1 %1952 }
 0x9bc   :  { %v2579_v51 = vpop.eup %2578  ;;  %2588 = vlog2.f32 %v1953_v43 }
 0x9bd   :  { %2020 = vst [vmem:[#allocation12 + $0x30] sm:$0xff] %v2004_v11  ;;  %v2005_v6 = vsub.f32 %v3458_v56, %v1981_v10  ;;  %v1975_v0 = vmul.f32 0.6931472, %v2579_v51 }
 0x9be   :  { %v2581_v49 = vpop.eup %2580  ;;  %v1959_v30 = vpop.xlane.xlu0 %1958 }
 0x9bf   :  { %2021 = vst [vmem:[#allocation12 + $0x38] sm:$0xff] %v2005_v6  ;;  %v2002_v57 = vsub.f32 %v3462_v61, %v1975_v0  ;;  %v1977_v53 = vmul.f32 0.6931472, %v2581_v49  ;;  %2590 = vlog2.f32 %v1959_v30 }
 0x9c0   :  { %v2583_v7 = vpop.eup %2582  ;;  %v1961_v12 = vpop.xlane.xlu1 %1960 }
 0x9c1   :  { %2018 = vst [vmem:[#allocation12 + $0x20] sm:$0xff] %v2002_v57  ;;  %v2003_v4 = vsub.f32 %v3466_v25, %v1977_v53  ;;  %v1987_v13 = vmul.f32 0.6931472, %v2583_v7  ;;  %2592 = vlog2.f32 %v1961_v12 }
 0x9c2   :  { %v2585_v41 = vpop.eup %2584  ;;  %v1963_v29 = vpop.xlane.xlu0 %1962 }
 0x9c3   :  { %2019 = vst [vmem:[#allocation12 + $0x28] sm:$0xff] %v2003_v4  ;;  %v2008_v56 = vsub.f32 %v3471_v34, %v1987_v13  ;;  %v1989_v15 = vmul.f32 0.6931472, %v2585_v41  ;;  %2594 = vlog2.f32 %v1963_v29 }
 0x9c4   :  { %v2587_v18 = vpop.eup %2586  ;;  %v1965_v9 = vpop.xlane.xlu1 %1964 }
 0x9c5   :  { %2024 = vst [vmem:[#allocation12 + $0x50] sm:$0xff] %v2008_v56  ;;  %v2009_v61 = vsub.f32 %v3476_v35, %v1989_v15  ;;  %v1983_v16 = vmul.f32 0.6931472, %v2587_v18  ;;  %2596 = vlog2.f32 %v1965_v9 }
 0x9c6   :  { %v2589_v17 = vpop.eup %2588 }
 0x9c7   :  { %2025 = vst [vmem:[#allocation12 + $0x58] sm:$0xff] %v2009_v61  ;;  %v2006_v25 = vsub.f32 %v3481_v44, %v1983_v16  ;;  %v1985_v23 = vmul.f32 0.6931472, %v2589_v17 }
 0x9c9   :  { %v2591_v24 = vpop.eup %2590  ;;  %2022 = vst [vmem:[#allocation12 + $0x40] sm:$0xff] %v2006_v25  ;;  %v2007_v36 = vsub.f32 %v3486_v47, %v1985_v23 }
 0x9ca   :  { %v1991_v14 = vmul.f32 0.6931472, %v2591_v24 }
 0x9cb   :  { %v2593_v34 = vpop.eup %2592  ;;  %2023 = vst [vmem:[#allocation12 + $0x48] sm:$0xff] %v2007_v36 }
 0x9cc   :  { %v2010_v62 = vsub.f32 %v3491_v55, %v1991_v14  ;;  %v1993_v27 = vmul.f32 0.6931472, %v2593_v34 }
 0x9cd   :  { %v2595_v8 = vpop.eup %2594 }
 0x9ce   :  { %2026 = vst [vmem:[#allocation12 + $0x60] sm:$0xff] %v2010_v62  ;;  %v2011_v35 = vsub.f32 %v3496_v54, %v1993_v27  ;;  %v1995_v22 = vmul.f32 0.6931472, %v2595_v8 }
 0x9cf   :  { %v2597_v28 = vpop.eup %2596 }
 0x9d0   :  { %2027 = vst [vmem:[#allocation12 + $0x68] sm:$0xff] %v2011_v35  ;;  %v2012_v44 = vsub.f32 %v3501_v2, %v1995_v22  ;;  %v1997_v31 = vmul.f32 0.6931472, %v2597_v28 }
 0x9d2   :  { %2028 = vst [vmem:[#allocation12 + $0x70] sm:$0xff] %v2012_v44  ;;  %v2013_v47 = vsub.f32 %v3506_v33, %v1997_v31 }
 0x9d4   :  { %2029 = vst [vmem:[#allocation12 + $0x78] sm:$0xff] %v2013_v47 }
 0x9d5   :  { %2719 = shalt.err (!%p2716_p2)
}
 0x9d6   :  { %s2720_s28 = scalar_lea.hbm %s3559_s14, 2048 }
 0x9d7   :  { %p2721_p3 = scmp.ne.s32.totalorder %s3559_s14, %s2720_s28  ;;  %p2724_p4 = scmp.lt.u32.totalorder %s2720_s28, %s3559_s14 }
 0x9d9   :  { %p2726_p5 = pnand %p2724_p4, %p2721_p3 }
 0x9db   :  { %2729 = shalt.err (!%p2726_p5)
}
 0x9dc   :  { %s2747_s15 = smov 128   ;;  %s2748_s16 = smov 8  }
 0x9dd   :  { %2041 = dma.vmem_to_hbm [thread:$0]  %s2036_s26, 2048, %s3559_s14, [#allocation5], %s2747_s15, %s2747_s15, %s2748_s16  }
 0x9de   :  { %2736 = dma.done.wait [#allocation5], 2048  }
 0x9df   :  { %2737 = vsyncadd [#allocation5], 4294965248 }
 0x9e0   :  { %2045 = vsyncpa [#allocation4], 1 }
 0x9e1   :  { %2046 = vsyncpa [#allocation7], 1 }
 0x9e2   :  { %2047 = vsyncpa [#allocation10], 1 }
 0x9e3   :  { %2048 = vsyncpa [#allocation5], 1 }

</bundles_post_ra>
